<compile_context>
chip_gen: v5e
topology: v5e:2x2
jax: 0.10.0
libtpu: 0.0.40
codegen_flags: <defaults>
</compile_context>

<pallas_src>
import jax
import jax.numpy as jnp
from jax import lax
from jax.experimental import pallas as pl
from jax.experimental.pallas import tpu as pltpu

LABELNUM = 2
TAGSET = LABELNUM + 2          # labelnum + START + STOP  (matches crf_fc out-features)
START = TAGSET - 2
STOP = TAGSET - 1
NEG_INF = -10000.0
NPAD = 128                     # lane-dense padded width for the fused head projection


def _round_up(x, m):
    return ((x + m - 1) // m) * m


# --------------------------------------------------------------------------------------
# Kernel A: fused fc2 + crf_fc projection over all B*S token rows.
#   x:(TILE_R, H) bf16, w:(H, 128) bf16 (cols 0:2 = fc2, cols 2:6 = crf_fc, rest zero),
#   b:(1, 128) f32  ->  o:(TILE_R, 128) f32.
# Row-tiled grid -> HBM->VMEM pipelining; "parallel" axis lets v7x shard across its 2 TCs.
# --------------------------------------------------------------------------------------
def fused_head_matmul_kernel(x_ref, w_ref, b_ref, o_ref):
    o_ref[...] = (
        jnp.dot(x_ref[...], w_ref[...], preferred_element_type=jnp.float32)
        + b_ref[...]
    )


# --------------------------------------------------------------------------------------
# Kernel B: IsQA head (mean CE + argmax) and linear-chain CRF (NLL via forward algorithm,
# Viterbi decode).  All inputs here are tiny (T = 4); the time recurrence is a single
# lax.fori_loop shared by the forward algorithm, gold-path scoring and Viterbi, with the
# (B, Tfrom, Tto) broadcast replaced by a T-way unroll over destination tags on
# lane-resident (B, T) arrays.  Backpointers live in a VMEM scratch ref.
# TODO(synk): CRF class source not provided; standard linear-chain CRF with START/STOP
#             tags (transitions[from, to]) and all-ones mask (as in the reference forward).
# --------------------------------------------------------------------------------------
def heads_kernel(isqa_logits_ref, y_isqa_ref, feats_ref, tags_oh_ref,
                 trans_t_ref, from_start_ref, to_stop_ref,
                 isqa_pred_ref, isqa_loss_ref, crf_loss_ref, crf_pred_ref,
                 bp_ref):
    # ---------------- IsQA: CrossEntropy (mean) + argmax ----------------
    logits = isqa_logits_ref[...]                                        # (B, 2) f32
    B = logits.shape[0]
    m = jnp.max(logits, axis=-1, keepdims=True)
    lse = m + jnp.log(jnp.sum(jnp.exp(logits - m), axis=-1, keepdims=True))
    classes = lax.broadcasted_iota(jnp.int32, logits.shape, 1)
    onehot_y = (classes == y_isqa_ref[...]).astype(jnp.float32)
    picked = jnp.sum(logits * onehot_y, axis=-1, keepdims=True)
    isqa_loss_ref[...] = jnp.sum(lse - picked, axis=0, keepdims=True) / float(B)
    # argmax over 2 classes (first-max on ties, matching torch.argmax)
    isqa_pred_ref[...] = (logits[:, 1:2] > logits[:, 0:1]).astype(jnp.int32)

    # ---------------- CRF ----------------
    Sm1, Bc, T = feats_ref.shape
    trans_t = trans_t_ref[...]                 # (T, T): trans_t[j, i] = trans[i, j]
    from_start = from_start_ref[...]           # (1, T) = trans[START, :]
    to_stop = to_stop_ref[...]                 # (1, T) = trans[:, STOP]

    # Hoisted loop invariants (JAX does not CSE broadcasts inside the loop).
    t_rows = [trans_t[j:j + 1, :] for j in range(T)]                 # (1, T): trans[:, j]
    lane_iota = lax.broadcasted_iota(jnp.int32, (Bc, T), 1)           # (B, T)
    lane_eq = [(lane_iota == j) for j in range(T)]
    col_iota = lax.broadcasted_iota(jnp.int32, (Bc, Sm1), 1)          # (B, Sm1)

    feats0 = feats_ref[0]                                             # (B, T)
    oh0 = tags_oh_ref[0]                                              # (B, T) gold one-hot
    alpha0 = feats0 + from_start                                      # forward scores
    delta0 = alpha0                                                   # Viterbi scores
    gold0 = (jnp.sum(feats0 * oh0, axis=-1, keepdims=True)
             + jnp.sum(from_start * oh0, axis=-1, keepdims=True))     # (B, 1)

    def fwd_body(t, carry):
        alpha, delta, gold, prev_oh = carry
        f_t = feats_ref[t]                                            # (B, T)
        oh_t = tags_oh_ref[t]                                         # (B, T)

        new_alpha = f_t
        new_delta = f_t
        bp_t = jnp.zeros((Bc, T), jnp.int32)
        trans_gold = jnp.zeros((Bc, 1), jnp.float32)
        for j in range(T):                                            # T = 4: tiny unroll
            row_j = t_rows[j]                                         # trans[i, j] as a row
            # forward algorithm: logsumexp over "from" tags (lane axis)
            s_j = alpha + row_j                                       # (B, T)
            m_j = jnp.max(s_j, axis=-1, keepdims=True)
            lse_j = m_j + jnp.log(jnp.sum(jnp.exp(s_j - m_j), axis=-1, keepdims=True))
            new_alpha = new_alpha + jnp.where(lane_eq[j], lse_j, 0.0)
            # Viterbi: max + first-index argmax over "from" tags
            d_j = delta + row_j
            best_j = jnp.max(d_j, axis=-1, keepdims=True)
            from_j = jnp.min(jnp.where(d_j >= best_j, lane_iota, T),
                             axis=-1, keepdims=True).astype(jnp.int32)
            new_delta = new_delta + jnp.where(lane_eq[j], best_j, 0.0)
            bp_t = bp_t + jnp.where(lane_eq[j], from_j, 0)
            # gold transition score: sum_i prev_oh[i] * trans[i, j], selected if tag_t == j
            tmp_j = jnp.sum(prev_oh * row_j, axis=-1, keepdims=True)  # (B, 1)
            trans_gold = trans_gold + oh_t[:, j:j + 1] * tmp_j

        bp_ref[t] = bp_t                                              # backpointers -> VMEM
        emit_t = jnp.sum(f_t * oh_t, axis=-1, keepdims=True)
        return new_alpha, new_delta, gold + emit_t + trans_gold, oh_t

    alpha, delta, gold, last_oh = lax.fori_loop(
        1, Sm1, fwd_body, (alpha0, delta0, gold0, oh0))

    # log partition + gold stop score -> NLL summed over batch
    final = alpha + to_stop
    mf = jnp.max(final, axis=-1, keepdims=True)
    logz = mf + jnp.log(jnp.sum(jnp.exp(final - mf), axis=-1, keepdims=True))   # (B, 1)
    gold = gold + jnp.sum(to_stop * last_oh, axis=-1, keepdims=True)
    crf_loss_ref[...] = jnp.sum(logz - gold, axis=0, keepdims=True)             # (1, 1)

    # Viterbi terminate + backtrack (second fori_loop reading backpointers from scratch)
    final_v = delta + to_stop
    best_f = jnp.max(final_v, axis=-1, keepdims=True)
    cur = jnp.min(jnp.where(final_v >= best_f, lane_iota, T),
                  axis=-1, keepdims=True).astype(jnp.int32)                     # (B, 1)
    pred = jnp.where(col_iota == (Sm1 - 1), cur, 0)                             # (B, Sm1)

    def back_body(s, carry):
        cur, pred = carry
        t = Sm1 - s                                                   # t = Sm1-1 ... 1
        bp_t = bp_ref[t]                                              # (B, T) int32
        cur_oh = lane_iota == cur
        new_cur = jnp.sum(jnp.where(cur_oh, bp_t, 0), axis=-1, keepdims=True)
        pred = pred + jnp.where(col_iota == (t - 1), new_cur, 0)
        return new_cur, pred

    _, pred = lax.fori_loop(1, Sm1, back_body, (cur, pred))
    crf_pred_ref[...] = pred


# --------------------------------------------------------------------------------------
# Parameters (deterministic, synthetic) and forward wrapper
# --------------------------------------------------------------------------------------
def make_params(key, hidden_size, vocab_size, type_vocab=2):
    ks = jax.random.split(key, 6)
    tok_table = 0.02 * jax.random.normal(ks[0], (vocab_size, hidden_size), jnp.float32)
    typ_table = 0.02 * jax.random.normal(ks[1], (type_vocab, hidden_size), jnp.float32)
    w2 = 0.05 * jax.random.normal(ks[2], (hidden_size, 2), jnp.float32)          # fc2
    b2 = jnp.zeros((1, 2), jnp.float32)
    wc = 0.05 * jax.random.normal(ks[3], (hidden_size, TAGSET), jnp.float32)     # crf_fc
    bc = jnp.zeros((1, TAGSET), jnp.float32)
    trans = 0.1 * jax.random.normal(ks[4], (TAGSET, TAGSET), jnp.float32)        # CRF
    trans = trans.at[:, START].set(NEG_INF)   # nothing transitions TO START
    trans = trans.at[STOP, :].set(NEG_INF)    # nothing transitions FROM STOP
    return dict(tok=tok_table, typ=typ_table, w2=w2, b2=b2, wc=wc, bc=bc, trans=trans)


@jax.jit
def netqa_forward(params, token_id_l, token_type_id_l, answer_offset_l,
                  answer_seq_label_l, IsQA_l):
    del answer_offset_l  # unused by the reference forward as well
    # TODO(synk): pretrained BERT encoder not reproduced; deterministic embedding-sum stand-in.
    emb = params["tok"][token_id_l] + params["typ"][token_type_id_l]             # (B, S, H)
    B, S, H = emb.shape
    Sm1 = S - 1
    T = TAGSET

    y_2d = answer_seq_label_l[:, 1:].astype(jnp.int32)                           # (B, Sm1)
    y_isqa = IsQA_l.astype(jnp.int32).reshape(B, 1)                              # (B, 1)

    # Fused, lane-padded head weight: cols 0:2 = fc2, cols 2:2+T = crf_fc, rest zero.
    w_comb = jnp.zeros((H, NPAD), jnp.float32)
    w_comb = w_comb.at[:, 0:2].set(params["w2"])
    w_comb = w_comb.at[:, 2:2 + T].set(params["wc"])
    w_comb = w_comb.astype(jnp.bfloat16)
    b_comb = jnp.zeros((1, NPAD), jnp.float32)
    b_comb = b_comb.at[:, 0:2].set(params["b2"])
    b_comb = b_comb.at[:, 2:2 + T].set(params["bc"])

    # Flatten + cast in HBM (free metadata / halves HBM read), pad rows to the tile size.
    R = B * S
    tile_r = min(256, _round_up(R, 8))
    r_pad = _round_up(R, tile_r)
    x = emb.reshape(R, H).astype(jnp.bfloat16)
    if r_pad > R:
        x = jnp.pad(x, ((0, r_pad - R), (0, 0)))

    logits_flat = pl.pallas_call(
        fused_head_matmul_kernel,
        grid=(r_pad // tile_r,),
        in_specs=[
            pl.BlockSpec((tile_r, H), lambda r: (r, 0)),
            pl.BlockSpec((H, NPAD), lambda r: (0, 0)),
            pl.BlockSpec((1, NPAD), lambda r: (0, 0)),
        ],
        out_specs=pl.BlockSpec((tile_r, NPAD), lambda r: (r, 0)),
        out_shape=jax.ShapeDtypeStruct((r_pad, NPAD), jnp.float32),
        compiler_params=pltpu.CompilerParams(
            dimension_semantics=("parallel",),
            vmem_limit_bytes=32 * 1024 * 1024,
        ),
    )(x, w_comb, b_comb)

    logits = logits_flat[:R].reshape(B, S, NPAD)
    isqa_logits = logits[:, 0, 0:2]                                              # (B, 2)
    feats_t = jnp.transpose(logits[:, 1:, 2:2 + T], (1, 0, 2))                   # (Sm1, B, T)
    tags_oh = jax.nn.one_hot(jnp.transpose(y_2d, (1, 0)), T, dtype=jnp.float32)  # (Sm1, B, T)

    trans = params["trans"]
    trans_t = trans.T                                                            # (T, T)
    from_start = trans[START][None, :]                                           # (1, T)
    to_stop = trans[:, STOP][None, :]                                            # (1, T)

    isqa_pred, isqa_loss, crf_loss, crf_pred = pl.pallas_call(
        heads_kernel,
        grid=(1,),
        in_specs=[
            pl.BlockSpec((B, 2), lambda i: (0, 0)),
            pl.BlockSpec((B, 1), lambda i: (0, 0)),
            pl.BlockSpec((Sm1, B, T), lambda i: (0, 0, 0)),
            pl.BlockSpec((Sm1, B, T), lambda i: (0, 0, 0)),
            pl.BlockSpec((T, T), lambda i: (0, 0)),
            pl.BlockSpec((1, T), lambda i: (0, 0)),
            pl.BlockSpec((1, T), lambda i: (0, 0)),
        ],
        out_specs=(
            pl.BlockSpec((B, 1), lambda i: (0, 0)),
            pl.BlockSpec((1, 1), lambda i: (0, 0)),
            pl.BlockSpec((1, 1), lambda i: (0, 0)),
            pl.BlockSpec((B, Sm1), lambda i: (0, 0)),
        ),
        out_shape=(
            jax.ShapeDtypeStruct((B, 1), jnp.int32),
            jax.ShapeDtypeStruct((1, 1), jnp.float32),
            jax.ShapeDtypeStruct((1, 1), jnp.float32),
            jax.ShapeDtypeStruct((B, Sm1), jnp.int32),
        ),
        scratch_shapes=[pltpu.VMEM((Sm1, B, T), jnp.int32)],   # Viterbi backpointers
        compiler_params=pltpu.CompilerParams(
            dimension_semantics=("arbitrary",),
            vmem_limit_bytes=32 * 1024 * 1024,
        ),
    )(isqa_logits, y_isqa, feats_t, tags_oh, trans_t, from_start, to_stop)

    return (isqa_pred,          # IsQA_prediction          (B, 1) int32
            crf_pred,           # crf_pred                 (B, S-1) int32
            isqa_loss[0, 0],    # IsQA_loss                scalar f32 (mean CE)
            crf_loss[0, 0],     # crf_loss                 scalar f32 (summed NLL)
            y_2d,               # y_2d                     (B, S-1)
            y_isqa)             # y_IsQA_2d.unsqueeze(-1)  (B, 1)


if __name__ == "__main__":
    key = jax.random.PRNGKey(0)
    B, S, H, V = 2, 8, 32, 64
    pkey, k1, k2, k3, k4 = jax.random.split(key, 5)
    params = make_params(pkey, H, V)

    token_id_l = jax.random.randint(k1, (B, S), 0, V, dtype=jnp.int32)
    token_type_id_l = jax.random.randint(k2, (B, S), 0, 2, dtype=jnp.int32)
    answer_offset_l = jnp.zeros((B, 2), jnp.int32)  # unused in forward
    answer_seq_label_l = jax.random.randint(k3, (B, S), 0, LABELNUM, dtype=jnp.int32)
    IsQA_l = jax.random.randint(k4, (B,), 0, 2, dtype=jnp.int32)

    out = netqa_forward(params, token_id_l, token_type_id_l, answer_offset_l,
                        answer_seq_label_l, IsQA_l)
    out = jax.block_until_ready(out)
    isqa_pred, crf_pred, isqa_loss, crf_loss, y_2d, y_isqa = out

    assert isqa_pred.shape == (B, 1) and crf_pred.shape == (B, S - 1)
    assert y_2d.shape == (B, S - 1) and y_isqa.shape == (B, 1)
    assert bool(jnp.isfinite(isqa_loss)) and bool(jnp.isfinite(crf_loss))
    assert bool(jnp.all(crf_pred >= 0)) and bool(jnp.all(crf_pred < TAGSET))
    print("KERNEL_OK")
</pallas_src>

<mosaic_0001>
module attributes {stable_mosaic.version = 11 : i64} {
  func.func @fused_head_matmul_kernel(%arg0: i32, %arg1: memref<16x32xbf16, #tpu.memory_space<vmem>>, %arg2: memref<32x128xbf16, #tpu.memory_space<vmem>>, %arg3: memref<1x128xf32, #tpu.memory_space<vmem>>, %arg4: memref<16x128xf32, #tpu.memory_space<vmem>>) attributes {dimension_semantics = [#tpu.dimension_semantics<parallel>], iteration_bounds = array<i64: 1>, scalar_prefetch = 0 : i64, scratch_operands = 0 : i64, tpu.core_type = #tpu.core_type<tc>, window_params = [{transform_indices = @transform_0, window_bounds = array<i64: 16, 32>}, {pipeline_mode = #tpu.pipeline_mode<synchronous>, transform_indices = @transform_1, window_bounds = array<i64: 32, 128>}, {pipeline_mode = #tpu.pipeline_mode<synchronous>, transform_indices = @transform_2, window_bounds = array<i64: 1, 128>}, {transform_indices = @transform_3, window_bounds = array<i64: 16, 128>}]} {
    %c0 = arith.constant 0 : index
    %c0_0 = arith.constant 0 : index
    %0 = vector.load %arg1[%c0, %c0_0] : memref<16x32xbf16, #tpu.memory_space<vmem>>, vector<16x32xbf16>
    %c0_1 = arith.constant 0 : index
    %c0_2 = arith.constant 0 : index
    %1 = vector.load %arg2[%c0_1, %c0_2] : memref<32x128xbf16, #tpu.memory_space<vmem>>, vector<32x128xbf16>
    %cst = arith.constant dense<0.000000e+00> : vector<16x128xf32>
    %2 = tpu.matmul %0, %1, %cst {dimension_numbers = #tpu.dot_dimension_numbers<[1], [0], [0], [1], [0, 0, 1, 1], [], []>} : vector<16x32xbf16>, vector<32x128xbf16>, vector<16x128xf32> -> vector<16x128xf32>
    %c0_3 = arith.constant 0 : index
    %c0_4 = arith.constant 0 : index
    %3 = vector.load %arg3[%c0_3, %c0_4] : memref<1x128xf32, #tpu.memory_space<vmem>>, vector<1x128xf32>
    %4 = vector.broadcast %3 : vector<1x128xf32> to vector<16x128xf32>
    %5 = arith.addf %2, %4 : vector<16x128xf32>
    %c0_5 = arith.constant 0 : index
    %c0_6 = arith.constant 0 : index
    %6 = vector.load %arg4[%c0_5, %c0_6] : memref<16x128xf32, #tpu.memory_space<vmem>>, vector<16x128xf32>
    tpu.vector_store %arg4[%c0_5, %c0_6], %5 {strides = array<i32>} : memref<16x128xf32, #tpu.memory_space<vmem>>, vector<16x128xf32>,
    return
  }
  func.func @transform_0(%arg0: i32) -> (i32, i32) {
    %c0_i32 = arith.constant 0 : i32
    %c0_i32_0 = arith.constant 0 : i32
    return %arg0, %c0_i32 : i32, i32
  }
  func.func @transform_1(%arg0: i32) -> (i32, i32) {
    %c0_i32 = arith.constant 0 : i32
    %c0_i32_0 = arith.constant 0 : i32
    %c0_i32_1 = arith.constant 0 : i32
    return %c0_i32, %c0_i32_0 : i32, i32
  }
  func.func @transform_2(%arg0: i32) -> (i32, i32) {
    %c0_i32 = arith.constant 0 : i32
    %c0_i32_0 = arith.constant 0 : i32
    %c0_i32_1 = arith.constant 0 : i32
    return %c0_i32, %c0_i32_0 : i32, i32
  }
  func.func @transform_3(%arg0: i32) -> (i32, i32) {
    %c0_i32 = arith.constant 0 : i32
    %c0_i32_0 = arith.constant 0 : i32
    return %arg0, %c0_i32 : i32, i32
  }
}

module attributes {stable_mosaic.version = 11 : i64} {
  func.func @heads_kernel(%arg0: i32, %arg1: memref<2x2xf32, #tpu.memory_space<vmem>>, %arg2: memref<2x1xi32, #tpu.memory_space<vmem>>, %arg3: memref<7x2x4xf32, #tpu.memory_space<vmem>>, %arg4: memref<7x2x4xf32, #tpu.memory_space<vmem>>, %arg5: memref<4x4xf32, #tpu.memory_space<vmem>>, %arg6: memref<1x4xf32, #tpu.memory_space<vmem>>, %arg7: memref<1x4xf32, #tpu.memory_space<vmem>>, %arg8: memref<2x1xi32, #tpu.memory_space<vmem>>, %arg9: memref<1x1xf32, #tpu.memory_space<vmem>>, %arg10: memref<1x1xf32, #tpu.memory_space<vmem>>, %arg11: memref<2x7xi32, #tpu.memory_space<vmem>>, %arg12: memref<7x2x4xi32, #tpu.memory_space<vmem>>) attributes {dimension_semantics = [#tpu.dimension_semantics<arbitrary>], iteration_bounds = array<i64: 1>, scalar_prefetch = 0 : i64, scratch_operands = 1 : i64, tpu.core_type = #tpu.core_type<tc>, window_params = [{pipeline_mode = #tpu.pipeline_mode<synchronous>, transform_indices = @transform_0, window_bounds = array<i64: 2, 2>}, {pipeline_mode = #tpu.pipeline_mode<synchronous>, transform_indices = @transform_1, window_bounds = array<i64: 2, 1>}, {pipeline_mode = #tpu.pipeline_mode<synchronous>, transform_indices = @transform_2, window_bounds = array<i64: 7, 2, 4>}, {pipeline_mode = #tpu.pipeline_mode<synchronous>, transform_indices = @transform_3, window_bounds = array<i64: 7, 2, 4>}, {pipeline_mode = #tpu.pipeline_mode<synchronous>, transform_indices = @transform_4, window_bounds = array<i64: 4, 4>}, {pipeline_mode = #tpu.pipeline_mode<synchronous>, transform_indices = @transform_5, window_bounds = array<i64: 1, 4>}, {pipeline_mode = #tpu.pipeline_mode<synchronous>, transform_indices = @transform_6, window_bounds = array<i64: 1, 4>}, {pipeline_mode = #tpu.pipeline_mode<synchronous>, transform_indices = @transform_7, window_bounds = array<i64: 2, 1>}, {pipeline_mode = #tpu.pipeline_mode<synchronous>, transform_indices = @transform_8, window_bounds = array<i64: 1, 1>}, {pipeline_mode = #tpu.pipeline_mode<synchronous>, transform_indices = @transform_9, window_bounds = array<i64: 1, 1>}, {pipeline_mode = #tpu.pipeline_mode<synchronous>, transform_indices = @transform_10, window_bounds = array<i64: 2, 7>}]} {
    %c0 = arith.constant 0 : index
    %c0_0 = arith.constant 0 : index
    %0 = vector.load %arg1[%c0, %c0_0] : memref<2x2xf32, #tpu.memory_space<vmem>>, vector<2x2xf32>
    %cst = arith.constant dense<0xFF800000> : vector<2xf32>
    %1 = vector.multi_reduction <maximumf>, %0, %cst [1] : vector<2x2xf32> to vector<2xf32>
    %2 = vector.shape_cast %1 : vector<2xf32> to vector<2x1xf32>
    %3 = vector.broadcast %2 : vector<2x1xf32> to vector<2x2xf32>
    %4 = arith.subf %0, %3 : vector<2x2xf32>
    %5 = math.exp %4 : vector<2x2xf32>
    %cst_1 = arith.constant dense<0.000000e+00> : vector<2xf32>
    %6 = vector.multi_reduction <add>, %5, %cst_1 [1] : vector<2x2xf32> to vector<2xf32>
    %7 = vector.shape_cast %6 : vector<2xf32> to vector<2x1xf32>
    %8 = math.log %7 : vector<2x1xf32>
    %9 = arith.addf %2, %8 : vector<2x1xf32>
    %10 = tpu.iota {dimensions = array<i32: 1>} : vector<2x2xi32>
    %c0_2 = arith.constant 0 : index
    %c0_3 = arith.constant 0 : index
    %11 = vector.load %arg2[%c0_2, %c0_3] : memref<2x1xi32, #tpu.memory_space<vmem>>, vector<2x1xi32>
    %12 = vector.broadcast %11 : vector<2x1xi32> to vector<2x2xi32>
    %13 = arith.cmpi eq, %10, %12 : vector<2x2xi32>
    %14 = arith.extui %13 : vector<2x2xi1> to vector<2x2xi32>
    %15 = arith.sitofp %14 : vector<2x2xi32> to vector<2x2xf32>
    %16 = arith.mulf %0, %15 : vector<2x2xf32>
    %cst_4 = arith.constant dense<0.000000e+00> : vector<2xf32>
    %17 = vector.multi_reduction <add>, %16, %cst_4 [1] : vector<2x2xf32> to vector<2xf32>
    %18 = vector.shape_cast %17 : vector<2xf32> to vector<2x1xf32>
    %19 = arith.subf %9, %18 : vector<2x1xf32>
    %cst_5 = arith.constant dense<0.000000e+00> : vector<1xf32>
    %20 = vector.multi_reduction <add>, %19, %cst_5 [0] : vector<2x1xf32> to vector<1xf32>
    %21 = vector.shape_cast %20 : vector<1xf32> to vector<1x1xf32>
    %cst_6 = arith.constant 2.000000e+00 : f32
    %22 = vector.broadcast %cst_6 : f32 to vector<1x1xf32>
    %23 = arith.divf %21, %22 : vector<1x1xf32>
    %c0_7 = arith.constant 0 : index
    %c0_8 = arith.constant 0 : index
    %24 = vector.load %arg9[%c0_7, %c0_8] : memref<1x1xf32, #tpu.memory_space<vmem>>, vector<1x1xf32>
    tpu.vector_store %arg9[%c0_7, %c0_8], %23 {strides = array<i32>} : memref<1x1xf32, #tpu.memory_space<vmem>>, vector<1x1xf32>,
    %25 = vector.extract_strided_slice %0 {offsets = [0, 1], sizes = [2, 1], strides = [1, 1]} : vector<2x2xf32> to vector<2x1xf32>
    %26 = vector.extract_strided_slice %0 {offsets = [0, 0], sizes = [2, 1], strides = [1, 1]} : vector<2x2xf32> to vector<2x1xf32>
    %27 = arith.cmpf ogt, %25, %26 : vector<2x1xf32>
    %28 = arith.extui %27 : vector<2x1xi1> to vector<2x1xi32>
    %c0_9 = arith.constant 0 : index
    %c0_10 = arith.constant 0 : index
    %29 = vector.load %arg8[%c0_9, %c0_10] : memref<2x1xi32, #tpu.memory_space<vmem>>, vector<2x1xi32>
    tpu.vector_store %arg8[%c0_9, %c0_10], %28 {strides = array<i32>} : memref<2x1xi32, #tpu.memory_space<vmem>>, vector<2x1xi32>,
    %c0_11 = arith.constant 0 : index
    %c0_12 = arith.constant 0 : index
    %30 = vector.load %arg5[%c0_11, %c0_12] : memref<4x4xf32, #tpu.memory_space<vmem>>, vector<4x4xf32>
    %c0_13 = arith.constant 0 : index
    %c0_14 = arith.constant 0 : index
    %31 = vector.load %arg6[%c0_13, %c0_14] : memref<1x4xf32, #tpu.memory_space<vmem>>, vector<1x4xf32>
    %c0_15 = arith.constant 0 : index
    %c0_16 = arith.constant 0 : index
    %32 = vector.load %arg7[%c0_15, %c0_16] : memref<1x4xf32, #tpu.memory_space<vmem>>, vector<1x4xf32>
    %33 = vector.extract_strided_slice %30 {offsets = [0, 0], sizes = [1, 4], strides = [1, 1]} : vector<4x4xf32> to vector<1x4xf32>
    %34 = vector.extract_strided_slice %30 {offsets = [1, 0], sizes = [1, 4], strides = [1, 1]} : vector<4x4xf32> to vector<1x4xf32>
    %35 = vector.extract_strided_slice %30 {offsets = [2, 0], sizes = [1, 4], strides = [1, 1]} : vector<4x4xf32> to vector<1x4xf32>
    %36 = vector.extract_strided_slice %30 {offsets = [3, 0], sizes = [1, 4], strides = [1, 1]} : vector<4x4xf32> to vector<1x4xf32>
    %37 = tpu.iota {dimensions = array<i32: 1>} : vector<2x4xi32>
    %c0_i32 = arith.constant 0 : i32
    %38 = vector.broadcast %c0_i32 : i32 to vector<2x4xi32>
    %39 = arith.cmpi eq, %37, %38 : vector<2x4xi32>
    %c1_i32 = arith.constant 1 : i32
    %40 = vector.broadcast %c1_i32 : i32 to vector<2x4xi32>
    %41 = arith.cmpi eq, %37, %40 : vector<2x4xi32>
    %c2_i32 = arith.constant 2 : i32
    %42 = vector.broadcast %c2_i32 : i32 to vector<2x4xi32>
    %43 = arith.cmpi eq, %37, %42 : vector<2x4xi32>
    %c3_i32 = arith.constant 3 : i32
    %44 = vector.broadcast %c3_i32 : i32 to vector<2x4xi32>
    %45 = arith.cmpi eq, %37, %44 : vector<2x4xi32>
    %46 = tpu.iota {dimensions = array<i32: 1>} : vector<2x7xi32>
    %c0_17 = arith.constant 0 : index
    %c0_18 = arith.constant 0 : index
    %c0_19 = arith.constant 0 : index
    %47 = vector.load %arg3[%c0_17, %c0_18, %c0_19] : memref<7x2x4xf32, #tpu.memory_space<vmem>>, vector<1x2x4xf32>
    %48 = vector.shape_cast %47 : vector<1x2x4xf32> to vector<2x4xf32>
    %c0_20 = arith.constant 0 : index
    %c0_21 = arith.constant 0 : index
    %c0_22 = arith.constant 0 : index
    %49 = vector.load %arg4[%c0_20, %c0_21, %c0_22] : memref<7x2x4xf32, #tpu.memory_space<vmem>>, vector<1x2x4xf32>
    %50 = vector.shape_cast %49 : vector<1x2x4xf32> to vector<2x4xf32>
    %51 = vector.broadcast %31 : vector<1x4xf32> to vector<2x4xf32>
    %52 = arith.addf %48, %51 : vector<2x4xf32>
    %53 = arith.mulf %48, %50 : vector<2x4xf32>
    %cst_23 = arith.constant dense<0.000000e+00> : vector<2xf32>
    %54 = vector.multi_reduction <add>, %53, %cst_23 [1] : vector<2x4xf32> to vector<2xf32>
    %55 = vector.shape_cast %54 : vector<2xf32> to vector<2x1xf32>
    %56 = vector.broadcast %31 : vector<1x4xf32> to vector<2x4xf32>
    %57 = arith.mulf %56, %50 : vector<2x4xf32>
    %cst_24 = arith.constant dense<0.000000e+00> : vector<2xf32>
    %58 = vector.multi_reduction <add>, %57, %cst_24 [1] : vector<2x4xf32> to vector<2xf32>
    %59 = vector.shape_cast %58 : vector<2xf32> to vector<2x1xf32>
    %60 = arith.addf %55, %59 : vector<2x1xf32>
    %c1_i32_25 = arith.constant 1 : i32
    %c6_i32 = arith.constant 6 : i32
    %61 = arith.addi %c1_i32_25, %c6_i32 : i32
    %c1_i32_26 = arith.constant 1 : i32
    %62:4 = scf.for %arg13 = %c1_i32_25 to %61 step %c1_i32_26 iter_args(%arg14 = %52, %arg15 = %52, %arg16 = %60, %arg17 = %50) -> (vector<2x4xf32>, vector<2x4xf32>, vector<2x1xf32>, vector<2x4xf32>)  : i32 {
      %102 = arith.index_cast %arg13 : i32 to index
      %c0_44 = arith.constant 0 : index
      %c0_45 = arith.constant 0 : index
      %103 = vector.load %arg3[%102, %c0_44, %c0_45] : memref<7x2x4xf32, #tpu.memory_space<vmem>>, vector<1x2x4xf32>
      %104 = vector.shape_cast %103 : vector<1x2x4xf32> to vector<2x4xf32>
      %105 = arith.index_cast %arg13 : i32 to index
      %c0_46 = arith.constant 0 : index
      %c0_47 = arith.constant 0 : index
      %106 = vector.load %arg4[%105, %c0_46, %c0_47] : memref<7x2x4xf32, #tpu.memory_space<vmem>>, vector<1x2x4xf32>
      %107 = vector.shape_cast %106 : vector<1x2x4xf32> to vector<2x4xf32>
      %c0_i32_48 = arith.constant 0 : i32
      %108 = vector.broadcast %c0_i32_48 : i32 to vector<2x4xi32>
      %cst_49 = arith.constant 0.000000e+00 : f32
      %109 = vector.broadcast %cst_49 : f32 to vector<2x1xf32>
      %110 = vector.broadcast %33 : vector<1x4xf32> to vector<2x4xf32>
      %111 = arith.addf %arg14, %110 : vector<2x4xf32>
      %cst_50 = arith.constant dense<0xFF800000> : vector<2xf32>
      %112 = vector.multi_reduction <maximumf>, %111, %cst_50 [1] : vector<2x4xf32> to vector<2xf32>
      %113 = vector.shape_cast %112 : vector<2xf32> to vector<2x1xf32>
      %114 = vector.broadcast %113 : vector<2x1xf32> to vector<2x4xf32>
      %115 = arith.subf %111, %114 : vector<2x4xf32>
      %116 = math.exp %115 : vector<2x4xf32>
      %cst_51 = arith.constant dense<0.000000e+00> : vector<2xf32>
      %117 = vector.multi_reduction <add>, %116, %cst_51 [1] : vector<2x4xf32> to vector<2xf32>
      %118 = vector.shape_cast %117 : vector<2xf32> to vector<2x1xf32>
      %119 = math.log %118 : vector<2x1xf32>
      %120 = arith.addf %113, %119 : vector<2x1xf32>
      %cst_52 = arith.constant 0.000000e+00 : f32
      %121 = vector.shape_cast %120 : vector<2x1xf32> to vector<2x1xf32>
      %122 = vector.broadcast %121 : vector<2x1xf32> to vector<2x4xf32>
      %123 = vector.broadcast %cst_52 : f32 to vector<2x4xf32>
      %124 = arith.select %39, %122, %123 : vector<2x4xi1>, vector<2x4xf32>
      %125 = arith.addf %104, %124 : vector<2x4xf32>
      %126 = vector.broadcast %33 : vector<1x4xf32> to vector<2x4xf32>
      %127 = arith.addf %arg15, %126 : vector<2x4xf32>
      %cst_53 = arith.constant dense<0xFF800000> : vector<2xf32>
      %128 = vector.multi_reduction <maximumf>, %127, %cst_53 [1] : vector<2x4xf32> to vector<2xf32>
      %129 = vector.shape_cast %128 : vector<2xf32> to vector<2x1xf32>
      %130 = vector.broadcast %129 : vector<2x1xf32> to vector<2x4xf32>
      %131 = arith.cmpf oge, %127, %130 : vector<2x4xf32>
      %c4_i32_54 = arith.constant 4 : i32
      %132 = vector.broadcast %c4_i32_54 : i32 to vector<2x4xi32>
      %133 = arith.select %131, %37, %132 : vector<2x4xi1>, vector<2x4xi32>
      %cst_55 = arith.constant dense<2147483647> : vector<2xi32>
      %134 = vector.multi_reduction <minsi>, %133, %cst_55 [1] : vector<2x4xi32> to vector<2xi32>
      %135 = vector.shape_cast %134 : vector<2xi32> to vector<2x1xi32>
      %cst_56 = arith.constant 0.000000e+00 : f32
      %136 = vector.shape_cast %129 : vector<2x1xf32> to vector<2x1xf32>
      %137 = vector.broadcast %136 : vector<2x1xf32> to vector<2x4xf32>
      %138 = vector.broadcast %cst_56 : f32 to vector<2x4xf32>
      %139 = arith.select %39, %137, %138 : vector<2x4xi1>, vector<2x4xf32>
      %140 = arith.addf %104, %139 : vector<2x4xf32>
      %c0_i32_57 = arith.constant 0 : i32
      %141 = vector.shape_cast %135 : vector<2x1xi32> to vector<2x1xi32>
      %142 = vector.broadcast %141 : vector<2x1xi32> to vector<2x4xi32>
      %143 = vector.broadcast %c0_i32_57 : i32 to vector<2x4xi32>
      %144 = arith.select %39, %142, %143 : vector<2x4xi1>, vector<2x4xi32>
      %145 = arith.addi %108, %144 : vector<2x4xi32>
      %146 = vector.broadcast %33 : vector<1x4xf32> to vector<2x4xf32>
      %147 = arith.mulf %arg17, %146 : vector<2x4xf32>
      %cst_58 = arith.constant dense<0.000000e+00> : vector<2xf32>
      %148 = vector.multi_reduction <add>, %147, %cst_58 [1] : vector<2x4xf32> to vector<2xf32>
      %149 = vector.shape_cast %148 : vector<2xf32> to vector<2x1xf32>
      %150 = vector.extract_strided_slice %107 {offsets = [0, 0], sizes = [2, 1], strides = [1, 1]} : vector<2x4xf32> to vector<2x1xf32>
      %151 = arith.mulf %150, %149 : vector<2x1xf32>
      %152 = arith.addf %109, %151 : vector<2x1xf32>
      %153 = vector.broadcast %34 : vector<1x4xf32> to vector<2x4xf32>
      %154 = arith.addf %arg14, %153 : vector<2x4xf32>
      %cst_59 = arith.constant dense<0xFF800000> : vector<2xf32>
      %155 = vector.multi_reduction <maximumf>, %154, %cst_59 [1] : vector<2x4xf32> to vector<2xf32>
      %156 = vector.shape_cast %155 : vector<2xf32> to vector<2x1xf32>
      %157 = vector.broadcast %156 : vector<2x1xf32> to vector<2x4xf32>
      %158 = arith.subf %154, %157 : vector<2x4xf32>
      %159 = math.exp %158 : vector<2x4xf32>
      %cst_60 = arith.constant dense<0.000000e+00> : vector<2xf32>
      %160 = vector.multi_reduction <add>, %159, %cst_60 [1] : vector<2x4xf32> to vector<2xf32>
      %161 = vector.shape_cast %160 : vector<2xf32> to vector<2x1xf32>
      %162 = math.log %161 : vector<2x1xf32>
      %163 = arith.addf %156, %162 : vector<2x1xf32>
      %cst_61 = arith.constant 0.000000e+00 : f32
      %164 = vector.shape_cast %163 : vector<2x1xf32> to vector<2x1xf32>
      %165 = vector.broadcast %164 : vector<2x1xf32> to vector<2x4xf32>
      %166 = vector.broadcast %cst_61 : f32 to vector<2x4xf32>
      %167 = arith.select %41, %165, %166 : vector<2x4xi1>, vector<2x4xf32>
      %168 = arith.addf %125, %167 : vector<2x4xf32>
      %169 = vector.broadcast %34 : vector<1x4xf32> to vector<2x4xf32>
      %170 = arith.addf %arg15, %169 : vector<2x4xf32>
      %cst_62 = arith.constant dense<0xFF800000> : vector<2xf32>
      %171 = vector.multi_reduction <maximumf>, %170, %cst_62 [1] : vector<2x4xf32> to vector<2xf32>
      %172 = vector.shape_cast %171 : vector<2xf32> to vector<2x1xf32>
      %173 = vector.broadcast %172 : vector<2x1xf32> to vector<2x4xf32>
      %174 = arith.cmpf oge, %170, %173 : vector<2x4xf32>
      %c4_i32_63 = arith.constant 4 : i32
      %175 = vector.broadcast %c4_i32_63 : i32 to vector<2x4xi32>
      %176 = arith.select %174, %37, %175 : vector<2x4xi1>, vector<2x4xi32>
      %cst_64 = arith.constant dense<2147483647> : vector<2xi32>
      %177 = vector.multi_reduction <minsi>, %176, %cst_64 [1] : vector<2x4xi32> to vector<2xi32>
      %178 = vector.shape_cast %177 : vector<2xi32> to vector<2x1xi32>
      %cst_65 = arith.constant 0.000000e+00 : f32
      %179 = vector.shape_cast %172 : vector<2x1xf32> to vector<2x1xf32>
      %180 = vector.broadcast %179 : vector<2x1xf32> to vector<2x4xf32>
      %181 = vector.broadcast %cst_65 : f32 to vector<2x4xf32>
      %182 = arith.select %41, %180, %181 : vector<2x4xi1>, vector<2x4xf32>
      %183 = arith.addf %140, %182 : vector<2x4xf32>
      %c0_i32_66 = arith.constant 0 : i32
      %184 = vector.shape_cast %178 : vector<2x1xi32> to vector<2x1xi32>
      %185 = vector.broadcast %184 : vector<2x1xi32> to vector<2x4xi32>
      %186 = vector.broadcast %c0_i32_66 : i32 to vector<2x4xi32>
      %187 = arith.select %41, %185, %186 : vector<2x4xi1>, vector<2x4xi32>
      %188 = arith.addi %145, %187 : vector<2x4xi32>
      %189 = vector.broadcast %34 : vector<1x4xf32> to vector<2x4xf32>
      %190 = arith.mulf %arg17, %189 : vector<2x4xf32>
      %cst_67 = arith.constant dense<0.000000e+00> : vector<2xf32>
      %191 = vector.multi_reduction <add>, %190, %cst_67 [1] : vector<2x4xf32> to vector<2xf32>
      %192 = vector.shape_cast %191 : vector<2xf32> to vector<2x1xf32>
      %193 = vector.extract_strided_slice %107 {offsets = [0, 1], sizes = [2, 1], strides = [1, 1]} : vector<2x4xf32> to vector<2x1xf32>
      %194 = arith.mulf %193, %192 : vector<2x1xf32>
      %195 = arith.addf %152, %194 : vector<2x1xf32>
      %196 = vector.broadcast %35 : vector<1x4xf32> to vector<2x4xf32>
      %197 = arith.addf %arg14, %196 : vector<2x4xf32>
      %cst_68 = arith.constant dense<0xFF800000> : vector<2xf32>
      %198 = vector.multi_reduction <maximumf>, %197, %cst_68 [1] : vector<2x4xf32> to vector<2xf32>
      %199 = vector.shape_cast %198 : vector<2xf32> to vector<2x1xf32>
      %200 = vector.broadcast %199 : vector<2x1xf32> to vector<2x4xf32>
      %201 = arith.subf %197, %200 : vector<2x4xf32>
      %202 = math.exp %201 : vector<2x4xf32>
      %cst_69 = arith.constant dense<0.000000e+00> : vector<2xf32>
      %203 = vector.multi_reduction <add>, %202, %cst_69 [1] : vector<2x4xf32> to vector<2xf32>
      %204 = vector.shape_cast %203 : vector<2xf32> to vector<2x1xf32>
      %205 = math.log %204 : vector<2x1xf32>
      %206 = arith.addf %199, %205 : vector<2x1xf32>
      %cst_70 = arith.constant 0.000000e+00 : f32
      %207 = vector.shape_cast %206 : vector<2x1xf32> to vector<2x1xf32>
      %208 = vector.broadcast %207 : vector<2x1xf32> to vector<2x4xf32>
      %209 = vector.broadcast %cst_70 : f32 to vector<2x4xf32>
      %210 = arith.select %43, %208, %209 : vector<2x4xi1>, vector<2x4xf32>
      %211 = arith.addf %168, %210 : vector<2x4xf32>
      %212 = vector.broadcast %35 : vector<1x4xf32> to vector<2x4xf32>
      %213 = arith.addf %arg15, %212 : vector<2x4xf32>
      %cst_71 = arith.constant dense<0xFF800000> : vector<2xf32>
      %214 = vector.multi_reduction <maximumf>, %213, %cst_71 [1] : vector<2x4xf32> to vector<2xf32>
      %215 = vector.shape_cast %214 : vector<2xf32> to vector<2x1xf32>
      %216 = vector.broadcast %215 : vector<2x1xf32> to vector<2x4xf32>
      %217 = arith.cmpf oge, %213, %216 : vector<2x4xf32>
      %c4_i32_72 = arith.constant 4 : i32
      %218 = vector.broadcast %c4_i32_72 : i32 to vector<2x4xi32>
      %219 = arith.select %217, %37, %218 : vector<2x4xi1>, vector<2x4xi32>
      %cst_73 = arith.constant dense<2147483647> : vector<2xi32>
      %220 = vector.multi_reduction <minsi>, %219, %cst_73 [1] : vector<2x4xi32> to vector<2xi32>
      %221 = vector.shape_cast %220 : vector<2xi32> to vector<2x1xi32>
      %cst_74 = arith.constant 0.000000e+00 : f32
      %222 = vector.shape_cast %215 : vector<2x1xf32> to vector<2x1xf32>
      %223 = vector.broadcast %222 : vector<2x1xf32> to vector<2x4xf32>
      %224 = vector.broadcast %cst_74 : f32 to vector<2x4xf32>
      %225 = arith.select %43, %223, %224 : vector<2x4xi1>, vector<2x4xf32>
      %226 = arith.addf %183, %225 : vector<2x4xf32>
      %c0_i32_75 = arith.constant 0 : i32
      %227 = vector.shape_cast %221 : vector<2x1xi32> to vector<2x1xi32>
      %228 = vector.broadcast %227 : vector<2x1xi32> to vector<2x4xi32>
      %229 = vector.broadcast %c0_i32_75 : i32 to vector<2x4xi32>
      %230 = arith.select %43, %228, %229 : vector<2x4xi1>, vector<2x4xi32>
      %231 = arith.addi %188, %230 : vector<2x4xi32>
      %232 = vector.broadcast %35 : vector<1x4xf32> to vector<2x4xf32>
      %233 = arith.mulf %arg17, %232 : vector<2x4xf32>
      %cst_76 = arith.constant dense<0.000000e+00> : vector<2xf32>
      %234 = vector.multi_reduction <add>, %233, %cst_76 [1] : vector<2x4xf32> to vector<2xf32>
      %235 = vector.shape_cast %234 : vector<2xf32> to vector<2x1xf32>
      %236 = vector.extract_strided_slice %107 {offsets = [0, 2], sizes = [2, 1], strides = [1, 1]} : vector<2x4xf32> to vector<2x1xf32>
      %237 = arith.mulf %236, %235 : vector<2x1xf32>
      %238 = arith.addf %195, %237 : vector<2x1xf32>
      %239 = vector.broadcast %36 : vector<1x4xf32> to vector<2x4xf32>
      %240 = arith.addf %arg14, %239 : vector<2x4xf32>
      %cst_77 = arith.constant dense<0xFF800000> : vector<2xf32>
      %241 = vector.multi_reduction <maximumf>, %240, %cst_77 [1] : vector<2x4xf32> to vector<2xf32>
      %242 = vector.shape_cast %241 : vector<2xf32> to vector<2x1xf32>
      %243 = vector.broadcast %242 : vector<2x1xf32> to vector<2x4xf32>
      %244 = arith.subf %240, %243 : vector<2x4xf32>
      %245 = math.exp %244 : vector<2x4xf32>
      %cst_78 = arith.constant dense<0.000000e+00> : vector<2xf32>
      %246 = vector.multi_reduction <add>, %245, %cst_78 [1] : vector<2x4xf32> to vector<2xf32>
      %247 = vector.shape_cast %246 : vector<2xf32> to vector<2x1xf32>
      %248 = math.log %247 : vector<2x1xf32>
      %249 = arith.addf %242, %248 : vector<2x1xf32>
      %cst_79 = arith.constant 0.000000e+00 : f32
      %250 = vector.shape_cast %249 : vector<2x1xf32> to vector<2x1xf32>
      %251 = vector.broadcast %250 : vector<2x1xf32> to vector<2x4xf32>
      %252 = vector.broadcast %cst_79 : f32 to vector<2x4xf32>
      %253 = arith.select %45, %251, %252 : vector<2x4xi1>, vector<2x4xf32>
      %254 = arith.addf %211, %253 : vector<2x4xf32>
      %255 = vector.broadcast %36 : vector<1x4xf32> to vector<2x4xf32>
      %256 = arith.addf %arg15, %255 : vector<2x4xf32>
      %cst_80 = arith.constant dense<0xFF800000> : vector<2xf32>
      %257 = vector.multi_reduction <maximumf>, %256, %cst_80 [1] : vector<2x4xf32> to vector<2xf32>
      %258 = vector.shape_cast %257 : vector<2xf32> to vector<2x1xf32>
      %259 = vector.broadcast %258 : vector<2x1xf32> to vector<2x4xf32>
      %260 = arith.cmpf oge, %256, %259 : vector<2x4xf32>
      %c4_i32_81 = arith.constant 4 : i32
      %261 = vector.broadcast %c4_i32_81 : i32 to vector<2x4xi32>
      %262 = arith.select %260, %37, %261 : vector<2x4xi1>, vector<2x4xi32>
      %cst_82 = arith.constant dense<2147483647> : vector<2xi32>
      %263 = vector.multi_reduction <minsi>, %262, %cst_82 [1] : vector<2x4xi32> to vector<2xi32>
      %264 = vector.shape_cast %263 : vector<2xi32> to vector<2x1xi32>
      %cst_83 = arith.constant 0.000000e+00 : f32
      %265 = vector.shape_cast %258 : vector<2x1xf32> to vector<2x1xf32>
      %266 = vector.broadcast %265 : vector<2x1xf32> to vector<2x4xf32>
      %267 = vector.broadcast %cst_83 : f32 to vector<2x4xf32>
      %268 = arith.select %45, %266, %267 : vector<2x4xi1>, vector<2x4xf32>
      %269 = arith.addf %226, %268 : vector<2x4xf32>
      %c0_i32_84 = arith.constant 0 : i32
      %270 = vector.shape_cast %264 : vector<2x1xi32> to vector<2x1xi32>
      %271 = vector.broadcast %270 : vector<2x1xi32> to vector<2x4xi32>
      %272 = vector.broadcast %c0_i32_84 : i32 to vector<2x4xi32>
      %273 = arith.select %45, %271, %272 : vector<2x4xi1>, vector<2x4xi32>
      %274 = arith.addi %231, %273 : vector<2x4xi32>
      %275 = vector.broadcast %36 : vector<1x4xf32> to vector<2x4xf32>
      %276 = arith.mulf %arg17, %275 : vector<2x4xf32>
      %cst_85 = arith.constant dense<0.000000e+00> : vector<2xf32>
      %277 = vector.multi_reduction <add>, %276, %cst_85 [1] : vector<2x4xf32> to vector<2xf32>
      %278 = vector.shape_cast %277 : vector<2xf32> to vector<2x1xf32>
      %279 = vector.extract_strided_slice %107 {offsets = [0, 3], sizes = [2, 1], strides = [1, 1]} : vector<2x4xf32> to vector<2x1xf32>
      %280 = arith.mulf %279, %278 : vector<2x1xf32>
      %281 = arith.addf %238, %280 : vector<2x1xf32>
      %282 = arith.index_cast %arg13 : i32 to index
      %c0_86 = arith.constant 0 : index
      %c0_87 = arith.constant 0 : index
      %283 = vector.load %arg12[%282, %c0_86, %c0_87] : memref<7x2x4xi32, #tpu.memory_space<vmem>>, vector<1x2x4xi32>
      %284 = vector.shape_cast %283 : vector<1x2x4xi32> to vector<2x4xi32>
      %285 = vector.shape_cast %274 : vector<2x4xi32> to vector<1x2x4xi32>
      tpu.vector_store %arg12[%282, %c0_86, %c0_87], %285 {strides = array<i32>} : memref<7x2x4xi32, #tpu.memory_space<vmem>>, vector<1x2x4xi32>,
      %286 = arith.mulf %104, %107 : vector<2x4xf32>
      %cst_88 = arith.constant dense<0.000000e+00> : vector<2xf32>
      %287 = vector.multi_reduction <add>, %286, %cst_88 [1] : vector<2x4xf32> to vector<2xf32>
      %288 = vector.shape_cast %287 : vector<2xf32> to vector<2x1xf32>
      %289 = arith.addf %arg16, %288 : vector<2x1xf32>
      %290 = arith.addf %289, %281 : vector<2x1xf32>
      scf.yield %254, %269, %290, %107 : vector<2x4xf32>, vector<2x4xf32>, vector<2x1xf32>, vector<2x4xf32>
    }
    %c6_i32_27 = arith.constant 6 : i32
    %63 = vector.broadcast %32 : vector<1x4xf32> to vector<2x4xf32>
    %64 = arith.addf %62#0, %63 : vector<2x4xf32>
    %cst_28 = arith.constant dense<0xFF800000> : vector<2xf32>
    %65 = vector.multi_reduction <maximumf>, %64, %cst_28 [1] : vector<2x4xf32> to vector<2xf32>
    %66 = vector.shape_cast %65 : vector<2xf32> to vector<2x1xf32>
    %67 = vector.broadcast %66 : vector<2x1xf32> to vector<2x4xf32>
    %68 = arith.subf %64, %67 : vector<2x4xf32>
    %69 = math.exp %68 : vector<2x4xf32>
    %cst_29 = arith.constant dense<0.000000e+00> : vector<2xf32>
    %70 = vector.multi_reduction <add>, %69, %cst_29 [1] : vector<2x4xf32> to vector<2xf32>
    %71 = vector.shape_cast %70 : vector<2xf32> to vector<2x1xf32>
    %72 = math.log %71 : vector<2x1xf32>
    %73 = arith.addf %66, %72 : vector<2x1xf32>
    %74 = vector.broadcast %32 : vector<1x4xf32> to vector<2x4xf32>
    %75 = arith.mulf %74, %62#3 : vector<2x4xf32>
    %cst_30 = arith.constant dense<0.000000e+00> : vector<2xf32>
    %76 = vector.multi_reduction <add>, %75, %cst_30 [1] : vector<2x4xf32> to vector<2xf32>
    %77 = vector.shape_cast %76 : vector<2xf32> to vector<2x1xf32>
    %78 = arith.addf %62#2, %77 : vector<2x1xf32>
    %79 = arith.subf %73, %78 : vector<2x1xf32>
    %cst_31 = arith.constant dense<0.000000e+00> : vector<1xf32>
    %80 = vector.multi_reduction <add>, %79, %cst_31 [0] : vector<2x1xf32> to vector<1xf32>
    %81 = vector.shape_cast %80 : vector<1xf32> to vector<1x1xf32>
    %c0_32 = arith.constant 0 : index
    %c0_33 = arith.constant 0 : index
    %82 = vector.load %arg10[%c0_32, %c0_33] : memref<1x1xf32, #tpu.memory_space<vmem>>, vector<1x1xf32>
    tpu.vector_store %arg10[%c0_32, %c0_33], %81 {strides = array<i32>} : memref<1x1xf32, #tpu.memory_space<vmem>>, vector<1x1xf32>,
    %83 = vector.broadcast %32 : vector<1x4xf32> to vector<2x4xf32>
    %84 = arith.addf %62#1, %83 : vector<2x4xf32>
    %cst_34 = arith.constant dense<0xFF800000> : vector<2xf32>
    %85 = vector.multi_reduction <maximumf>, %84, %cst_34 [1] : vector<2x4xf32> to vector<2xf32>
    %86 = vector.shape_cast %85 : vector<2xf32> to vector<2x1xf32>
    %87 = vector.broadcast %86 : vector<2x1xf32> to vector<2x4xf32>
    %88 = arith.cmpf oge, %84, %87 : vector<2x4xf32>
    %c4_i32 = arith.constant 4 : i32
    %89 = vector.broadcast %c4_i32 : i32 to vector<2x4xi32>
    %90 = arith.select %88, %37, %89 : vector<2x4xi1>, vector<2x4xi32>
    %cst_35 = arith.constant dense<2147483647> : vector<2xi32>
    %91 = vector.multi_reduction <minsi>, %90, %cst_35 [1] : vector<2x4xi32> to vector<2xi32>
    %92 = vector.shape_cast %91 : vector<2xi32> to vector<2x1xi32>
    %c6_i32_36 = arith.constant 6 : i32
    %93 = vector.broadcast %c6_i32_36 : i32 to vector<2x7xi32>
    %94 = arith.cmpi eq, %46, %93 : vector<2x7xi32>
    %c0_i32_37 = arith.constant 0 : i32
    %95 = vector.shape_cast %92 : vector<2x1xi32> to vector<2x1xi32>
    %96 = vector.broadcast %95 : vector<2x1xi32> to vector<2x7xi32>
    %97 = vector.broadcast %c0_i32_37 : i32 to vector<2x7xi32>
    %98 = arith.select %94, %96, %97 : vector<2x7xi1>, vector<2x7xi32>
    %c1_i32_38 = arith.constant 1 : i32
    %c6_i32_39 = arith.constant 6 : i32
    %99 = arith.addi %c1_i32_38, %c6_i32_39 : i32
    %c1_i32_40 = arith.constant 1 : i32
    %100:2 = scf.for %arg13 = %c1_i32_38 to %99 step %c1_i32_40 iter_args(%arg14 = %92, %arg15 = %98) -> (vector<2x1xi32>, vector<2x7xi32>)  : i32 {
      %c7_i32 = arith.constant 7 : i32
      %102 = arith.subi %c7_i32, %arg13 : i32
      %103 = arith.index_cast %102 : i32 to index
      %c0_44 = arith.constant 0 : index
      %c0_45 = arith.constant 0 : index
      %104 = vector.load %arg12[%103, %c0_44, %c0_45] : memref<7x2x4xi32, #tpu.memory_space<vmem>>, vector<1x2x4xi32>
      %105 = vector.shape_cast %104 : vector<1x2x4xi32> to vector<2x4xi32>
      %106 = vector.broadcast %arg14 : vector<2x1xi32> to vector<2x4xi32>
      %107 = arith.cmpi eq, %37, %106 : vector<2x4xi32>
      %c0_i32_46 = arith.constant 0 : i32
      %108 = vector.broadcast %c0_i32_46 : i32 to vector<2x4xi32>
      %109 = arith.select %107, %105, %108 : vector<2x4xi1>, vector<2x4xi32>
      %cst_47 = arith.constant dense<0> : vector<2xi32>
      %110 = vector.multi_reduction <add>, %109, %cst_47 [1] : vector<2x4xi32> to vector<2xi32>
      %111 = vector.shape_cast %110 : vector<2xi32> to vector<2x1xi32>
      %c1_i32_48 = arith.constant 1 : i32
      %112 = arith.subi %102, %c1_i32_48 : i32
      %113 = vector.broadcast %112 : i32 to vector<2x7xi32>
      %114 = arith.cmpi eq, %46, %113 : vector<2x7xi32>
      %c0_i32_49 = arith.constant 0 : i32
      %115 = vector.shape_cast %111 : vector<2x1xi32> to vector<2x1xi32>
      %116 = vector.broadcast %115 : vector<2x1xi32> to vector<2x7xi32>
      %117 = vector.broadcast %c0_i32_49 : i32 to vector<2x7xi32>
      %118 = arith.select %114, %116, %117 : vector<2x7xi1>, vector<2x7xi32>
      %119 = arith.addi %arg15, %118 : vector<2x7xi32>
      scf.yield %111, %119 : vector<2x1xi32>, vector<2x7xi32>
    }
    %c6_i32_41 = arith.constant 6 : i32
    %c0_42 = arith.constant 0 : index
    %c0_43 = arith.constant 0 : index
    %101 = vector.load %arg11[%c0_42, %c0_43] : memref<2x7xi32, #tpu.memory_space<vmem>>, vector<2x7xi32>
    tpu.vector_store %arg11[%c0_42, %c0_43], %100#1 {strides = array<i32>} : memref<2x7xi32, #tpu.memory_space<vmem>>, vector<2x7xi32>,
    return
  }
  func.func @transform_0(%arg0: i32) -> (i32, i32) {
    %c0_i32 = arith.constant 0 : i32
    %c0_i32_0 = arith.constant 0 : i32
    %c0_i32_1 = arith.constant 0 : i32
    return %c0_i32, %c0_i32_0 : i32, i32
  }
  func.func @transform_1(%arg0: i32) -> (i32, i32) {
    %c0_i32 = arith.constant 0 : i32
    %c0_i32_0 = arith.constant 0 : i32
    %c0_i32_1 = arith.constant 0 : i32
    return %c0_i32, %c0_i32_0 : i32, i32
  }
  func.func @transform_2(%arg0: i32) -> (i32, i32, i32) {
    %c0_i32 = arith.constant 0 : i32
    %c0_i32_0 = arith.constant 0 : i32
    %c0_i32_1 = arith.constant 0 : i32
    %c0_i32_2 = arith.constant 0 : i32
    return %c0_i32, %c0_i32_0, %c0_i32_1 : i32, i32, i32
  }
  func.func @transform_3(%arg0: i32) -> (i32, i32, i32) {
    %c0_i32 = arith.constant 0 : i32
    %c0_i32_0 = arith.constant 0 : i32
    %c0_i32_1 = arith.constant 0 : i32
    %c0_i32_2 = arith.constant 0 : i32
    return %c0_i32, %c0_i32_0, %c0_i32_1 : i32, i32, i32
  }
  func.func @transform_4(%arg0: i32) -> (i32, i32) {
    %c0_i32 = arith.constant 0 : i32
    %c0_i32_0 = arith.constant 0 : i32
    %c0_i32_1 = arith.constant 0 : i32
    return %c0_i32, %c0_i32_0 : i32, i32
  }
  func.func @transform_5(%arg0: i32) -> (i32, i32) {
    %c0_i32 = arith.constant 0 : i32
    %c0_i32_0 = arith.constant 0 : i32
    %c0_i32_1 = arith.constant 0 : i32
    return %c0_i32, %c0_i32_0 : i32, i32
  }
  func.func @transform_6(%arg0: i32) -> (i32, i32) {
    %c0_i32 = arith.constant 0 : i32
    %c0_i32_0 = arith.constant 0 : i32
    %c0_i32_1 = arith.constant 0 : i32
    return %c0_i32, %c0_i32_0 : i32, i32
  }
  func.func @transform_7(%arg0: i32) -> (i32, i32) {
    %c0_i32 = arith.constant 0 : i32
    %c0_i32_0 = arith.constant 0 : i32
    %c0_i32_1 = arith.constant 0 : i32
    return %c0_i32, %c0_i32_0 : i32, i32
  }
  func.func @transform_8(%arg0: i32) -> (i32, i32) {
    %c0_i32 = arith.constant 0 : i32
    %c0_i32_0 = arith.constant 0 : i32
    %c0_i32_1 = arith.constant 0 : i32
    return %c0_i32, %c0_i32_0 : i32, i32
  }
  func.func @transform_9(%arg0: i32) -> (i32, i32) {
    %c0_i32 = arith.constant 0 : i32
    %c0_i32_0 = arith.constant 0 : i32
    %c0_i32_1 = arith.constant 0 : i32
    return %c0_i32, %c0_i32_0 : i32, i32
  }
  func.func @transform_10(%arg0: i32) -> (i32, i32) {
    %c0_i32 = arith.constant 0 : i32
    %c0_i32_0 = arith.constant 0 : i32
    %c0_i32_1 = arith.constant 0 : i32
    return %c0_i32, %c0_i32_0 : i32, i32
  }
}

</mosaic_0001>

<bundles_post_ra>
// kernel: netqa_forward.2
= control target key start
LH: loop header
LB: loop body
LE: loop exit
PB: predicated region body
PF: predicated region fallthrough
CT: control target
= control target key end

     0   :  { %vm42_vm0 = vcmask 261120   ;;  %s121_s1 = inlined_call_operand.vmem [shape: bf16[32,128], index: 1, kind: input, shape index: {}]   ;;  %s122_s2 = inlined_call_operand.vmem [shape: f32[1,128], index: 2, kind: input, shape index: {}]   ;;  %s123_s0 = inlined_call_operand.vmem [shape: bf16[16,32], index: 0, kind: input, shape index: {}]   ;;  %s124_s3 = inlined_call_operand.vmem [shape: f32[16,128], index: 3, kind: output, shape index: {}]  }
   0x1   :  { %v81_v0 = vld [vmem:[%s121_s1 + $0x8] sm:$0xff]  ;;  %v80_v1 = vld [vmem:[%s121_s1] sm:$0xff] }
   0x2   :  { %52 = vmatpush.bf16.msra.mxu0 %v81_v0  ;;  %v79_v2 = vld [vmem:[%s123_s0] sm:$0xff] }
   0x3   :  { %v82_v3 = vld [vmem:[%s122_s2] ss:$0 sm:$0xff] }
   0x6   :  { %53 = vmatpush.bf16.msra.mxu0 %v80_v1 }
   0x9   :  { %78 = vmatmul.msk.bf16.vlgmr.msra.gmra.mxu0 %vm42_vm0, %v79_v2 }
  0x86   :  { %v55_v4 = vpop.f32.mrf.mxu0 }
  0x87   :  { %v56_v5 = vadd.f32 %v82_v3, %v55_v4 }
  0x89   :  { %60 = vst [vmem:[%s124_s3] sm:$0xff] %v56_v5 }
  0x8e   :  { %v57_v6 = vpop.f32.mrf.mxu0 }
  0x8f   :  { %v58_v7 = vadd.f32 %v82_v3, %v57_v6 }
  0x91   :  { %61 = vst [vmem:[%s124_s3 + $0x8] sm:$0xff] %v58_v7 }

// kernel: netqa_forward.3
= control target key start
LH: loop header
LB: loop body
LE: loop exit
PB: predicated region body
PF: predicated region fallthrough
CT: control target
= control target key end

     0   :  { %16 = vsyncpa [#allocation4], 0  ;;  %vm33_vm0 = vcmask 9216   ;;  %v753_v2 = vmov 0   ;;  %s1084_s0 = inlined_call_operand.vmem [shape: f32[2,2], index: 0, kind: input, shape index: {}]   ;;  %s1085_s1 = inlined_call_operand.vmem [shape: s32[2,1], index: 1, kind: input, shape index: {}]   ;;  %s1086_s2 = inlined_call_operand.vmem [shape: f32[7,2,4], index: 2, kind: input, shape index: {}]   ;;  %s1087_s3 = inlined_call_operand.vmem [shape: f32[7,2,4], index: 3, kind: input, shape index: {}]   ;;  %s1088_s4 = inlined_call_operand.vmem [shape: f32[4,4], index: 4, kind: input, shape index: {}]   ;;  %s1089_s5 = inlined_call_operand.vmem [shape: f32[1,4], index: 5, kind: input, shape index: {}]   ;;  %s1090_s6 = inlined_call_operand.vmem [shape: f32[1,4], index: 6, kind: input, shape index: {}]   ;;  %s1091_s7 = inlined_call_operand.vmem [shape: s32[2,1], index: 7, kind: output, shape index: {0}]   ;;  %s1092_s8 = inlined_call_operand.hbm [shape: f32[1,1], index: 8, kind: output, shape index: {1}]   ;;  %s1093_s9 = inlined_call_operand.hbm [shape: f32[1,1], index: 9, kind: output, shape index: {2}]   ;;  %s1094_s10 = inlined_call_operand.hbm [shape: s32[2,7], index: 10, kind: output, shape index: {3}]  }
   0x1   :  { %v32_v0 = vld [vmem:[%s1084_s0] sm:$0x3]  ;;  %585 = vset.pattern.permute.xlu0 %v753_v2 }
   0x2   :  { %v34_v1 = vsel %vm33_vm0, %v32_v0, -inf }
   0x3   :  { %17 = vsyncpa [#allocation6], 0  ;;  %35 = vmax.xlane.f32.xlu0 %v34_v1  ;;  %s754_s15 = smov 1   ;;  %v48_v3 = vld [vmem:[%s1085_s1] sm:$0x3]  ;;  %v46_v4 = vlaneseq  ;;  %v755_v15 = vmov 0.0  }
   0x4   :  { %79 = vrot.lane.b32.xlu1 %v32_v0, %s754_s15  ;;  %v586_v6 = vld [vmem:[%s1089_s5] ss:$0 sm:$0xff]  ;;  %vm102_vm6 = vcmask 25600   ;;  %s756_s21 = smov 127   ;;  %v757_v27 = vmov 2.0   ;;  %vm60_vm8 = vcmask 1041408  }
   0x5   :  { %v826_v5 = vand.u32 127, %v46_v4  ;;  %v95_v7 = vld [vmem:[%s1086_s2] sm:$0x3]  ;;  %vm76_vm10 = vcmask 0   ;;  %vm86_vm11 = vcmask 1024   ;;  %s873_s26 = smov 1  }
   0x6   :  { %v838_v8 = vadd.f32 %v586_v6, %v95_v7   ;;  %v96_v18 = vld [vmem:[%s1087_s3] sm:$0x3]  }
   0x7   :  { %vm91_vm1 = vcmp.eq.s32.totalorder %v826_v5, 0  ;;  %vm92_vm2 = vcmp.eq.s32.totalorder %v826_v5, 1  ;;  %vm93_vm3 = vcmp.eq.s32.totalorder %v826_v5, 2  ;;  %vm94_vm4 = vcmp.eq.s32.totalorder %v826_v5, 3  ;;  %v851_v28 = vld [vmem:[%s1088_s4] sm:$0xf] }
   0x8   :  { %v101_v20 = vmul.f32 %v96_v18, %v95_v7  ;;  %v106_v22 = vmul.f32 %v586_v6, %v96_v18  ;;  %v856_v29 = vld [vmem:[%s1090_s6] sm:$0x1]  ;;  %v1095_v53 = vmov %v838_v8 }
   0xa   :  { %v103_v21 = vsel %vm102_vm6, %v101_v20, 0.0  ;;  %v107_v23 = vsel %vm102_vm6, %v106_v22, 0.0 }
  0x17   :  { %50 = vperm.xlu0 %585, %v48_v3  }
  0x76   :  { %v36_v9 = vpop.xlane.xlu0 %35  ;;  %v80_v24 = vpop.permute.xlu1 %79 }
  0x77   :  { %v37_v10 = vsub.f32 %v32_v0, %v36_v9  ;;  %vm82_vm7 = vcmp.gt.f32.partialorder %v32_v0, %v80_v24 }
  0x78   :  { %v83_v25 = vsel %vm82_vm7, 1, %v753_v2 }
  0x79   :  { %v38_v11 = vmul.f32 1.442695, %v37_v10 }
  0x7b   :  { %587 = vpow2.f32 %v38_v11 }
  0x7c   :  { %589 = vrcp.f32 %v757_v27 }
  0x81   :  { %v588_v12 = vpop.eup %587 }
  0x82   :  { %v40_v13 = vsel %vm33_vm0, %v588_v12, 0.0  ;;  %v590_v30 = vpop.eup %589 }
  0x83   :  { %41 = vadd.xlane.f32.xlu1 %v40_v13  ;;  %v69_v33 = vmul.f32 2.0, %v590_v30  ;;  %vm73_vm9 = vweird.f32 %v590_v30 }
  0x85   :  { %v70_v36 = vsub.f32 1.0, %v69_v33 }
  0x87   :  { %v71_v40 = vmul.f32 %v590_v30, %v70_v36 }
  0x89   :  { %v51_v14 = vpop.permute.xlu0 %50  ;;  %v72_v44 = vadd.f32 %v590_v30, %v71_v40 }
  0x8a   :  { %vm52_vm5 = vcmp.eq.s32.totalorder %v826_v5, %v51_v14 }
  0x8b   :  { %v507_v16 = vsel %vm52_vm5, 1.0, %v755_v15  ;;  %v74_v47 = vsel %vm73_vm9, %v590_v30, %v72_v44 }
  0x8c   :  { %v55_v17 = vmul.f32 %v507_v16, %v32_v0 }
  0x8e   :  { %v56_v19 = vsel %vm33_vm0, %v55_v17, 0.0 }
  0x8f   :  { %57 = vadd.xlane.f32.xlu2 %v56_v19 }
  0x97   :  { %104 = vadd.xlane.f32.xlu2 %v103_v21 }
  0x9f   :  { %108 = vadd.xlane.f32.xlu2 %v107_v23 }
  0xb7   :  { %84 = vrot.lane.b32.xlu2 %v83_v25, %s756_s21 }
  0xf6   :  { %v42_v26 = vpop.xlane.xlu1 %41 }
  0xf7   :  { %591 = vlog2.f32 %v42_v26 }
  0xfd   :  { %v592_v31 = vpop.eup %591 }
  0xfe   :  { %v44_v32 = vmul.f32 0.6931472, %v592_v31 }
 0x100   :  { %v45_v34 = vadd.f32 %v44_v32, %v36_v9 }
 0x102   :  { %v58_v35 = vpop.xlane.xlu2 %57 }
 0x103   :  { %v59_v37 = vsub.f32 %v45_v34, %v58_v35 }
 0x105   :  { %v61_v38 = vsel %vm60_vm8, %v59_v37, 0.0 }
 0x106   :  { %v62_v39 = vrot.slane %v61_v38, 4 }
 0x108   :  { %v63_v41 = vadd.f32 %v62_v39, %v61_v38 }
 0x10a   :  { %v64_v42 = vrot.slane %v63_v41, 2  ;;  %v105_v43 = vpop.xlane.xlu2 %104 }
 0x10c   :  { %v65_v45 = vadd.f32 %v64_v42, %v63_v41 }
 0x10e   :  { %v66_v46 = vrot.slane %v65_v45, 1 }
 0x110   :  { %v67_v48 = vadd.f32 %v66_v46, %v65_v45 }
 0x112   :  { %v75_v49 = vmul.f32 %v74_v47, %v67_v48  ;;  %v109_v50 = vpop.xlane.xlu2 %108 }
 0x113   :  { %v110_v51 = vadd.f32 %v109_v50, %v105_v43  }
 0x114   :  { %77 = vst.msk [vmem:[#allocation3] sm:$0x1] %vm76_vm10, %v75_v49 }
 0x11a   :  { %v85_v52 = vpop.permute.xlu2 %84 }
 0x11b   :  { %87 = vst.msk [vmem:[%s1091_s7] sm:$0x3] %vm86_vm11, %v85_v52 }
 0x11c LB: > { %v223_v54 = vperm.slane %v851_v28, 2  ;;  %v126_v55 = vperm.slane %v851_v28, 0  ;;  %v274_v56 = vperm.slane %v851_v28, 3  ;;  %v172_v59 = vperm.slane %v851_v28, 1  ;;  %s914_s7 = sshll.u32 %s739_s26, 1  ;;  %s758_s13 = smov 127   ;;  %s739_s26 = sphi %s873_s26, %s116_s26   ;;  %v735_v8 = vphi %v838_v8, %v1100_v8   ;;  %v731_v53 = vphi %v1095_v53, %v1099_v53   ;;  %v727_v51 = vphi %v110_v51, %v1098_v51   ;;  %v723_v18 = vphi %v96_v18, %v1097_v18  }
 0x11d   : > { %s122_s29 = scalar_lea.vmem %s1086_s2, %s914_s7  ;;  %s124_s12 = scalar_lea.vmem %s1087_s3, %s914_s7 }
 0x11e   : > { %v239_v57 = vadd.f32 %v731_v53, %v223_v54  ;;  %v142_v58 = vadd.f32 %v731_v53, %v126_v55  ;;  %v890_v60 = vadd.f32 %v735_v8, %v126_v55  ;;  %v896_v0 = vadd.f32 %v731_v53, %v274_v56  ;;  %v930_v26 = vld [vmem:[%s122_s29] sm:$0x3]  ;;  %s759_s14 = smov 125   ;;  %s760_s15 = smov 126  }
 0x11f   : > { %v188_v1 = vadd.f32 %v731_v53, %v172_v59  ;;  %v898_v2 = vadd.f32 %v735_v8, %v223_v54  ;;  %v173_v7 = vadd.f32 %v735_v8, %v172_v59  ;;  %v275_v9 = vadd.f32 %v735_v8, %v274_v56  ;;  %s325_s16 = scalar_lea.vmem [#allocation2], %s914_s7  ;;  %s116_s26 = sadd.s32 1, %s739_s26  }
 0x120   : > { %v240_v61 = vsel %vm102_vm6, %v239_v57, -inf  ;;  %v143_v62 = vsel %vm102_vm6, %v142_v58, -inf  ;;  %v128_v63 = vsel %vm102_vm6, %v890_v60, -inf  ;;  %v291_v3 = vsel %vm102_vm6, %v896_v0, -inf  ;;  %p113_p0 = scmp.ge.s32.totalorder %s116_s26, 7  }
 0x121   : > { %241 = vmax.xlane.f32.xlu1 %v240_v61  ;;  %144 = vmax.xlane.f32.xlu0 %v143_v62  ;;  %v189_v4 = vsel %vm102_vm6, %v188_v1, -inf  ;;  %v225_v6 = vsel %vm102_vm6, %v898_v2, -inf  ;;  %v166_v10 = vmul.f32 %v723_v18, %v126_v55  ;;  %v174_v11 = vsel %vm102_vm6, %v173_v7, -inf  ;;  %s1062_s2 = smov (%p113_p0), 1  }
 0x122   : > { %129 = vmax.xlane.f32.xlu2 %v128_v63  ;;  %v276_v12 = vsel %vm102_vm6, %v275_v9, -inf  ;;  %v213_v14 = vmul.f32 %v723_v18, %v172_v59  ;;  %v315_v15 = vmul.f32 %v723_v18, %v274_v56  ;;  %v264_v38 = vmul.f32 %v723_v18, %v223_v54 }
 0x123   : > { %v167_v13 = vsel %vm102_vm6, %v166_v10, 0.0 }
 0x124   : > { %v214_v16 = vsel %vm102_vm6, %v213_v14, 0.0  ;;  %v316_v8 = vsel %vm102_vm6, %v315_v15, 0.0  ;;  %v265_v45 = vsel %vm102_vm6, %v264_v38, 0.0 }
 0x129   : > { %292 = vmax.xlane.f32.xlu1 %v291_v3  ;;  %190 = vmax.xlane.f32.xlu0 %v189_v4 }
 0x12a   : > { %226 = vmax.xlane.f32.xlu2 %v225_v6 }
 0x131   : > { %175 = vmax.xlane.f32.xlu1 %v174_v11  ;;  %277 = vmax.xlane.f32.xlu0 %v276_v12 }
 0x132   : > { %168 = vadd.xlane.f32.xlu2 %v167_v13 }
 0x139   : > { %215 = vadd.xlane.f32.xlu0 %v214_v16 }
 0x13a   : > { %317 = vadd.xlane.f32.xlu2 %v316_v8 }
 0x194   : > { %v242_v17 = vpop.xlane.xlu1 %241  ;;  %v145_v19 = vpop.xlane.xlu0 %144 }
 0x195   : > { %vm243_vm12 = vcmp.ge.f32.partialorder %v239_v57, %v242_v17  ;;  %vm146_vm13 = vcmp.ge.f32.partialorder %v142_v58, %v145_v19  ;;  %v163_v27 = vsel %vm91_vm1, %v145_v19, 0.0  ;;  %v934_v30 = vpop.xlane.xlu2 %129  ;;  %v260_v36 = vsel %vm93_vm3, %v242_v17, 0.0  ;;  %v975_v57 = vld [vmem:[%s124_s12] sm:$0x3]  }
 0x196   : > { %v244_v20 = vsel %vm243_vm12, %v826_v5, 4  ;;  %v147_v21 = vsel %vm146_vm13, %v826_v5, 4  ;;  %v164_v33 = vadd.f32 %v163_v27, %v930_v26  ;;  %v131_v6 = vsub.f32 %v890_v60, %v934_v30 }
 0x197   : > { %v923_v22 = vsel %vm102_vm6, %v244_v20, 2147483647  ;;  %v926_v23 = vsel %vm102_vm6, %v147_v21, 2147483647 }
 0x198   : > { %v247_v24 = vshra.s32 %v923_v22, 16  ;;  %v150_v25 = vshra.s32 %v926_v23, 16  ;;  %v246_v60 = vand.u32 65535, %v923_v22  ;;  %v149_v16 = vand.u32 65535, %v926_v23 }
 0x19a   : > { %v936_v31 = vcvt.s32.f32 %v247_v24  ;;  %v938_v32 = vcvt.s32.f32 %v150_v25  ;;  %v248_v19 = vcvt.s32.f32 %v246_v60  ;;  %v151_v20 = vcvt.s32.f32 %v149_v16 }
 0x19c   : > { %250 = vmin.xlane.f32.xlu1 %v936_v31  ;;  %v293_v34 = vpop.xlane.xlu1 %292  ;;  %v191_v35 = vpop.xlane.xlu0 %190  ;;  %153 = vmin.xlane.f32.xlu0 %v938_v32 }
 0x19d   : > { %vm192_vm14 = vcmp.ge.f32.partialorder %v188_v1, %v191_v35  ;;  %v209_v37 = vsel %vm92_vm2, %v191_v35, 0.0  ;;  %v311_v41 = vsel %vm94_vm4, %v293_v34, 0.0  ;;  %v960_v18 = vpop.xlane.xlu2 %226  ;;  %vm294_vm15 = vcmp.ge.f32.partialorder %v896_v0, %v293_v34 }
 0x19e   : > { %v193_v39 = vsel %vm192_vm14, %v826_v5, 4  ;;  %v210_v40 = vadd.f32 %v209_v37, %v164_v33  ;;  %v228_v54 = vsub.f32 %v898_v2, %v960_v18  ;;  %v295_v4 = vsel %vm294_vm15, %v826_v5, 4 }
 0x19f   : > { %v952_v42 = vsel %vm102_vm6, %v193_v39, 2147483647 }
 0x1a0   : > { %v261_v43 = vadd.f32 %v260_v36, %v210_v40  ;;  %v196_v44 = vshra.s32 %v952_v42, 16  ;;  %v229_v56 = vmul.f32 1.442695, %v228_v54  ;;  %v195_v22 = vand.u32 65535, %v952_v42 }
 0x1a1   : > { %v327_v40 = vmul.f32 %v975_v57, %v930_v26 }
 0x1a2   : > { %v956_v53 = vadd.f32 %v311_v41, %v261_v43   ;;  %v958_v47 = vcvt.s32.f32 %v196_v44  ;;  %v197_v23 = vcvt.s32.f32 %v195_v22 }
 0x1a3   : > { %v328_v43 = vsel %vm102_vm6, %v327_v40, 0.0 }
 0x1a4   : > { %v1096_v46 = vmov %v956_v53  ;;  %v962_v48 = vpop.xlane.xlu1 %175  ;;  %v964_v49 = vpop.xlane.xlu0 %277  ;;  %199 = vmin.xlane.f32.xlu0 %v958_v47  ;;  %266 = vadd.xlane.f32.xlu1 %v265_v45 }
 0x1a5   : > { %v177_v50 = vsub.f32 %v173_v7, %v962_v48  ;;  %v279_v52 = vsub.f32 %v275_v9, %v964_v49  ;;  %v296_v7 = vsel %vm102_vm6, %v295_v4, 2147483647  ;;  %v132_v9 = vmul.f32 1.442695, %v131_v6  ;;  %v987_v14 = vpop.xlane.xlu2 %168 }
 0x1a6   : > { %v298_v10 = vshra.s32 %v296_v7, 16  ;;  %v297_v35 = vand.u32 65535, %v296_v7 }
 0x1a7   : > { %v178_v55 = vmul.f32 1.442695, %v177_v50  ;;  %v280_v53 = vmul.f32 1.442695, %v279_v52 }
 0x1a8   : > { %v300_v11 = vcvt.s32.f32 %v298_v10  ;;  %v299_v37 = vcvt.s32.f32 %v297_v35 }
 0x1a9   : > { %593 = vpow2.f32 %v280_v53 }
 0x1aa   : > { %595 = vpow2.f32 %v178_v55 }
 0x1ab   : > { %597 = vpow2.f32 %v229_v56 }
 0x1ac   : > { %v216_v58 = vpop.xlane.xlu0 %215  ;;  %599 = vpow2.f32 %v132_v9 }
 0x1ad   : > { %v217_v59 = vmul.f32 %v216_v58, %v975_v57  ;;  %v318_v15 = vpop.xlane.xlu2 %317 }
 0x1ae   : > { %v319_v0 = vmul.f32 %v318_v15, %v975_v57 }
 0x1af   : > { %v594_v61 = vpop.eup %593  ;;  %219 = vrot.lane.b32.xlu2 %v217_v59, %s758_s13 }
 0x1b0   : > { %v596_v62 = vpop.eup %595  ;;  %v282_v63 = vsel %vm102_vm6, %v594_v61, 0.0 }
 0x1b1   : > { %283 = vadd.xlane.f32.xlu1 %v282_v63  ;;  %v180_v1 = vsel %vm102_vm6, %v596_v62, 0.0  ;;  %v598_v2 = vpop.eup %597 }
 0x1b2   : > { %181 = vadd.xlane.f32.xlu0 %v180_v1  ;;  %v231_v3 = vsel %vm102_vm6, %v598_v2, 0.0  ;;  %v600_v12 = vpop.eup %599 }
 0x1b3   : > { %v134_v13 = vsel %vm102_vm6, %v600_v12, 0.0 }
 0x1ba   : > { %232 = vadd.xlane.f32.xlu0 %v231_v3 }
 0x1d8   : > { %301 = vmin.xlane.f32.xlu2 %v300_v11 }
 0x1e0   : > { %135 = vadd.xlane.f32.xlu2 %v134_v13 }
 0x1f8   : > { %321 = vrot.lane.b32.xlu2 %v319_v0, %s759_s14 }
 0x20f   : > { %v992_v8 = vpop.xlane.xlu1 %250  ;;  %v994_v17 = vpop.xlane.xlu0 %153 }
 0x210   : > { %vm252_vm0 = vcmp.eq.f32.partialorder %v936_v31, %v992_v8  ;;  %vm155_vm5 = vcmp.eq.f32.partialorder %v938_v32, %v994_v17  ;;  %v1003_v31 = vpop.permute.xlu2 %219  ;;  %v160_v6 = vcvt.f32.s32 %v994_v17 }
 0x211   : > { %v253_v21 = vsel %vm252_vm0, %v248_v19, inf  ;;  %v156_v24 = vsel %vm155_vm5, %v151_v20, inf }
 0x212   : > { %254 = vmin.xlane.f32.xlu0 %v253_v21  ;;  %157 = vmin.xlane.f32.xlu1 %v156_v24  ;;  %v161_v10 = vshll.u32 %v160_v6, 16 }
 0x217   : > { %v200_v25 = vpop.xlane.xlu0 %199  ;;  %v267_v33 = vpop.xlane.xlu1 %266 }
 0x218   : > { %vm201_vm7 = vcmp.eq.f32.partialorder %v958_v47, %v200_v25  ;;  %v268_v34 = vmul.f32 %v267_v33, %v975_v57  ;;  %v206_v9 = vcvt.f32.s32 %v200_v25 }
 0x219   : > { %v202_v27 = vsel %vm201_vm7, %v197_v23, inf  ;;  %v170_v23 = vmul.f32 %v987_v14, %v975_v57 }
 0x21a   : > { %203 = vmin.xlane.f32.xlu1 %v202_v27  ;;  %v207_v15 = vshll.u32 %v206_v9, 16 }
 0x224   : > { %v284_v41 = vpop.xlane.xlu1 %283 }
 0x225   : > { %v182_v32 = vpop.xlane.xlu0 %181 }
 0x226   : > { %270 = vrot.lane.b32.xlu0 %v268_v34, %s760_s15  ;;  %601 = vlog2.f32 %v182_v32  ;;  %v222_v32 = vadd.f32 %v1003_v31, %v170_v23  ;;  %v334_v31 = vperm.slane (%p113_p0), %v856_v29, 0 }
 0x22c   : > { %v602_v44 = vpop.eup %601 }
 0x22d   : > { %v233_v39 = vpop.xlane.xlu0 %232  ;;  %v184_v50 = vmul.f32 0.6931472, %v602_v44 }
 0x22e   : > { %603 = vlog2.f32 %v233_v39 }
 0x22f   : > { %605 = vlog2.f32 %v284_v41  ;;  %v185_v56 = vadd.f32 %v184_v50, %v962_v48  ;;  %v349_v50 = vmul.f32 (%p113_p0), %v334_v31, %v975_v57 }
 0x231   : > { %v186_v1 = vsel %vm92_vm2, %v185_v56, 0.0 }
 0x234   : > { %v604_v45 = vpop.eup %603 }
 0x235   : > { %v606_v47 = vpop.eup %605  ;;  %v235_v54 = vmul.f32 0.6931472, %v604_v45 }
 0x236   : > { %v286_v53 = vmul.f32 0.6931472, %v606_v47 }
 0x237   : > { %v236_v59 = vadd.f32 %v235_v54, %v960_v18 }
 0x238   : > { %v287_v63 = vadd.f32 %v286_v53, %v964_v49  ;;  %v1099_v53 = vmov %v1096_v46 }
 0x239   : > { %v237_v3 = vsel %vm93_vm3, %v236_v59, 0.0 }
 0x24b   : > { %v302_v36 = vpop.xlane.xlu2 %301 }
 0x24c   : > { %vm303_vm8 = vcmp.eq.f32.partialorder %v300_v11, %v302_v36  ;;  %v308_v22 = vcvt.f32.s32 %v302_v36 }
 0x24d   : > { %v304_v38 = vsel %vm303_vm8, %v299_v37, inf }
 0x24e   : > { %305 = vmin.xlane.f32.xlu1 %v304_v38  ;;  %v309_v27 = vshll.u32 %v308_v22, 16 }
 0x253   : > { %v136_v42 = vpop.xlane.xlu2 %135 }
 0x254   : > { %607 = vlog2.f32 %v136_v42 }
 0x256   : > { %329 = vadd.xlane.f32.xlu1 %v328_v43  ;;  %v363_v43 = vadd.f32 (%p113_p0), %v334_v31, %v1096_v46 }
 0x258   :  { %v364_v44 = vsel (%p113_p0), %vm102_vm6, %v363_v43, -inf }
 0x259   :  { %365 = vmax.xlane.f32.xlu0 (%p113_p0), %v364_v44 }
 0x25a   : > { %v608_v52 = vpop.eup %607 }
 0x25b   : > { %v138_v55 = vmul.f32 0.6931472, %v608_v52  ;;  %v322_v40 = vpop.permute.xlu2 %321  ;;  %v350_v52 = vsel (%p113_p0), %vm102_vm6, %v349_v50, 0.0 }
 0x25c   :  { %351 = vadd.xlane.f32.xlu2 (%p113_p0), %v350_v52 }
 0x25d   : > { %v139_v58 = vadd.f32 %v138_v55, %v934_v30  ;;  %v288_v30 = vsel %vm94_vm4, %v287_v63, 0.0 }
 0x25f   : > { %v140_v61 = vsel %vm91_vm1, %v139_v58, 0.0 }
 0x260   : > { %v141_v62 = vadd.f32 %v140_v61, %v930_v26  ;;  %v257_v26 = vcvt.f32.s32 %v992_v8 }
 0x262   : > { %v187_v2 = vadd.f32 %v186_v1, %v141_v62  ;;  %v258_v13 = vshll.u32 %v257_v26, 16 }
 0x264   : > { %v238_v4 = vadd.f32 %v237_v3, %v187_v2 }
 0x266   : > { %v289_v48 = vadd.f32 %v288_v30, %v238_v4  }
 0x268   :  { %v336_v45 = vadd.f32 (%p113_p0), %v334_v31, %v289_v48 }
 0x26a   :  { %v337_v47 = vsel (%p113_p0), %vm102_vm6, %v336_v45, -inf }
 0x26b   :  { %338 = vmax.xlane.f32.xlu0 (%p113_p0), %v337_v47 }
 0x285   : > { %v158_v18 = vpop.xlane.xlu1 %157  ;;  %v255_v7 = vpop.xlane.xlu0 %254 }
 0x286   : > { %v159_v49 = vcvt.f32.s32 %v158_v18  ;;  %v256_v11 = vcvt.f32.s32 %v255_v7  ;;  %v1097_v18 = vmov %v975_v57 }
 0x288   : > { %v162_v0 = vadd.s32 %v161_v10, %v159_v49  ;;  %v259_v16 = vadd.s32 %v258_v13, %v256_v11 }
 0x28a   : > { %v165_v20 = vsel %vm91_vm1, %v162_v0, 0  ;;  %v262_v8 = vsel %vm93_vm3, %v259_v16, 0 }
 0x28d   : > { %v204_v12 = vpop.xlane.xlu1 %203 }
 0x28e   : > { %v205_v60 = vcvt.f32.s32 %v204_v12 }
 0x290   : > { %v208_v19 = vadd.s32 %v207_v15, %v205_v60 }
 0x292   : > { %v211_v17 = vsel %vm92_vm2, %v208_v19, 0  ;;  %vm384_vm2 = vcmp.eq.s32.totalorder (%p113_p0), %v826_v5, 6 }
 0x293   : > { %v212_v21 = vadd.s32 %v211_v17, %v165_v20 }
 0x295   : > { %v263_v24 = vadd.s32 %v262_v8, %v212_v21  ;;  %v1100_v8 = vmov %v289_v48 }
 0x298   : > { %v271_v34 = vpop.permute.xlu0 %270 }
 0x299   : > { %v273_v37 = vadd.f32 %v271_v34, %v222_v32 }
 0x29b   : > { %v324_v41 = vadd.f32 %v322_v40, %v273_v37 }
 0x2c1   : > { %v306_v25 = vpop.xlane.xlu1 %305 }
 0x2c2   : > { %v307_v33 = vcvt.f32.s32 %v306_v25 }
 0x2c4   : > { %v310_v35 = vadd.s32 %v309_v27, %v307_v33 }
 0x2c6   : > { %v313_v38 = vsel %vm94_vm4, %v310_v35, 0 }
 0x2c7   : > { %v314_v39 = vadd.s32 %v313_v38, %v263_v24 }
 0x2c9   : > { %326 = vst.msk [vmem:[%s325_s16] sm:$0x3] %vm102_vm6, %v314_v39  ;;  %v330_v36 = vpop.xlane.xlu1 %329 }
 0x2ca   : > { %v331_v42 = vadd.f32 %v727_v51, %v330_v36  ;;  %115 = sbr.rel (!%p113_p0) target bundleno = 284 (0x11c), region = 90 }
 0x2cc   : > { %v332_v14 = vadd.f32 %v331_v42, %v324_v41   ;;  %v366_v54 = vpop.xlane.xlu0 (%p113_p0), %365 }
 0x2cd   :  { %vm367_vm9 = vcmp.ge.f32.partialorder (%p113_p0), %v363_v43, %v366_v54 }
 0x2ce   : > { %v1098_v51 = vmov %v332_v14  ;;  %v368_v55 = vsel (%p113_p0), %vm367_vm9, %v826_v5, 4 }
 0x2cf   :  { %v369_v28 = vsel %vm102_vm6, %v368_v55, 2147483647  ;;  %v352_v2 = vpop.xlane.xlu2 %351 }
 0x2d0   :  { %v371_v29 = vshra.s32 %v369_v28, 16  ;;  %v370_v57 = vand.u32 65535, %v369_v28  ;;  %v353_v30 = vadd.f32 %v352_v2, %v332_v14 }
 0x2d2   :  { %v373_v51 = vcvt.s32.f32 %v371_v29  ;;  %v372_v62 = vcvt.s32.f32 %v370_v57 }
 0x2d4   :  { %374 = vmin.xlane.f32.xlu1 %v373_v51 }
 0x2de   :  { %v339_v46 = vpop.xlane.xlu0 %338 }
 0x2df   :  { %v340_v53 = vsub.f32 %v336_v45, %v339_v46 }
 0x2e1   :  { %v341_v56 = vmul.f32 1.442695, %v340_v53 }
 0x2e3   :  { %609 = vpow2.f32 %v341_v56 }
 0x2e9   :  { %v610_v58 = vpop.eup %609 }
 0x2ea   :  { %v343_v59 = vsel %vm102_vm6, %v610_v58, 0.0 }
 0x2eb   :  { %344 = vadd.xlane.f32.xlu1 %v343_v59 }
 0x347   :  { %v375_v61 = vpop.xlane.xlu1 %374 }
 0x348   :  { %vm376_vm1 = vcmp.eq.f32.partialorder %v373_v51, %v375_v61  ;;  %v381_v12 = vcvt.f32.s32 %v375_v61 }
 0x349   :  { %v377_v63 = vsel %vm376_vm1, %v372_v62, inf }
 0x34a   :  { %378 = vmin.xlane.f32.xlu2 %v377_v63  ;;  %v382_v15 = vshll.u32 %v381_v12, 16 }
 0x35e   :  { %v345_v1 = vpop.xlane.xlu1 %344 }
 0x35f   :  { %611 = vlog2.f32 %v345_v1 }
 0x365   :  { %v612_v3 = vpop.eup %611 }
 0x366   :  { %v347_v4 = vmul.f32 0.6931472, %v612_v3 }
 0x368   :  { %v348_v48 = vadd.f32 %v347_v4, %v339_v46 }
 0x36a   :  { %v354_v18 = vsub.f32 %v348_v48, %v353_v30 }
 0x36c   :  { %v355_v6 = vsel %vm86_vm11, %v354_v18, 0.0 }
 0x36d   :  { %v356_v7 = vrot.slane %v355_v6, 4 }
 0x36f   :  { %v357_v26 = vadd.f32 %v356_v7, %v355_v6 }
 0x371   :  { %v358_v9 = vrot.slane %v357_v26, 2 }
 0x373   :  { %v359_v49 = vadd.f32 %v358_v9, %v357_v26 }
 0x375   :  { %v360_v10 = vrot.slane %v359_v49, 1 }
 0x377   :  { %v361_v11 = vadd.f32 %v360_v10, %v359_v49 }
 0x379   :  { %362 = vst.msk [vmem:[#allocation5] sm:$0x1] %vm76_vm10, %v361_v11 }
 0x3bd   :  { %v379_v13 = vpop.xlane.xlu2 %378 }
 0x3be   :  { %v380_v0 = vcvt.f32.s32 %v379_v13 }
 0x3c0   :  { %v383_v60 = vadd.s32 %v382_v15, %v380_v0  }
 0x3c2   :  { %v385_v16 = vsel %vm384_vm2, %v383_v60, 0   ;;  %v745_v20 = vmov %v383_v60  }
 0x3c3   :  { %v741_v19 = vmov %v385_v16  }
 0x3c4 LB: > { %s394_s3 = ssub.s32 7, %s751_s2  ;;  %vm398_vm3 = vcmp.eq.s32.totalorder %v826_v5, %v747_v20  ;;  %s413_s18 = ssub.s32 6, %s751_s2  ;;  %s751_s2 = sphi %s1062_s2, %s391_s2   ;;  %v747_v20 = vphi %v745_v20, %v412_v20   ;;  %v743_v19 = vphi %v741_v19, %v742_v19  }
 0x3c5   : > { %s509_s17 = sshll.u32 %s394_s3, 1  ;;  %v414_v34 = vstv %s413_s18  ;;  %s391_s2 = sadd.s32 1, %s751_s2  }
 0x3c6   : > { %s396_s0 = scalar_lea.vmem [#allocation2], %s509_s17  ;;  %vm415_vm4 = vcmp.eq.s32.totalorder %v826_v5, %v414_v34  ;;  %p388_p1 = scmp.ge.s32.totalorder %s391_s2, 7  }
 0x3c7   : > { %v397_v17 = vld [vmem:[%s396_s0] sm:$0x3]  ;;  %vm418_vm10 = vcmask (%p388_p1), 50176   ;;  %s440_s1 = sshll.u32 (%p388_p1), %s1093_s9, 4  ;;  %s761_s5 = smov (%p388_p1), [#allocation5]   ;;  %s441_s1 = int_to_ptr.hbm [resolvable:$true] %s440_s1 }
 0x3c8   : > { %v399_v21 = vsel %vm398_vm3, %v397_v17, 0  ;;  %s438_s21 = sshll.u32 (%p388_p1), %s761_s5, 4  ;;  %s762_s22 = smov (%p388_p1), [#allocation3]   ;;  %s439_s21 = int_to_ptr.vmem [resolvable:$true] %s438_s21 }
 0x3c9   : > { %v400_v8 = vsel %vm102_vm6, %v399_v21, 0  ;;  %443 = dma.vmem_to_hbm [thread:$0]  (%p388_p1), %s439_s21, 16, %s441_s1, [#allocation6]  }
 0x3ca   : > { %v402_v24 = vshrl.u32 %v400_v8, 16  ;;  %v401_v25 = vand.u32 65535, %v400_v8  ;;  %s427_s23 = sshll.u32 (%p388_p1), %s762_s22, 4  ;;  %s429_s4 = sshll.u32 (%p388_p1), %s1092_s8, 4  ;;  %s428_s23 = int_to_ptr.vmem [resolvable:$true] %s427_s23  ;;  %s430_s4 = int_to_ptr.hbm [resolvable:$true] %s429_s4 }
 0x3cb   :  { %432 = dma.vmem_to_hbm [thread:$0]  (%p388_p1), %s428_s23, 16, %s430_s4, [#allocation4]  }
 0x3cc   : > { %v404_v22 = vcvt.s32.f32 %v402_v24  ;;  %v403_v23 = vcvt.s32.f32 %v401_v25  ;;  %s451_s7 = sshll.u32 (%p388_p1), %s1094_s10, 4  ;;  %s763_s9 = smov (%p388_p1), [#allocation7]   ;;  %s452_s7 = int_to_ptr.hbm [resolvable:$true] %s451_s7 }
 0x3cd   :  { %s449_s27 = sshll.u32 (%p388_p1), %s763_s9, 4  ;;  %s450_s27 = int_to_ptr.vmem [resolvable:$true] %s449_s27 }
 0x3ce   : > { %407 = vadd.xlane.f32.xlu0 %v404_v22 }
 0x3d6   : > { %405 = vadd.xlane.f32.xlu0 %v403_v23 }
 0x441   : > { %v408_v27 = vpop.xlane.xlu0 %407 }
 0x442   : > { %v410_v33 = vcvt.f32.s32 %v408_v27 }
 0x444   : > { %v411_v35 = vshll.u32 %v410_v33, 16 }
 0x449   : > { %v406_v32 = vpop.xlane.xlu0 %405 }
 0x44a   : > { %v409_v37 = vcvt.f32.s32 %v406_v32 }
 0x44c   : > { %v412_v20 = vadd.s32 %v411_v35, %v409_v37  }
 0x44d   :  { %390 = sbr.rel (!%p388_p1) target bundleno = 964 (0x3c4), region = 101 }
 0x44e   : > { %v416_v38 = vsel %vm415_vm4, %v412_v20, 0 }
 0x44f   : > { %v417_v39 = vadd.s32 %v743_v19, %v416_v38  }
 0x451   : > { %v742_v19 = vmov %v417_v39   ;;  %419 = vst.msk [vmem:[#allocation7] sm:$0x3] (%p388_p1), %vm418_vm10, %v417_v39 }
 0x452   :  { %454 = dma.vmem_to_hbm [thread:$0]  %s450_s27, 32, %s452_s7, [#allocation6]  }
 0x453   :  { %717 = dma.done.wait [#allocation4], 16  }
 0x454   :  { %718 = vsyncadd [#allocation4], 4294967280 }
 0x455   :  { %719 = dma.done.wait [#allocation6], 48  }
 0x456   :  { %720 = vsyncadd [#allocation6], 4294967248 }
 0x457   :  { %469 = vsyncpa [#allocation4], 1 }
 0x458   :  { %470 = vsyncpa [#allocation6], 1 }

</bundles_post_ra>
